<compile_context>
chip_gen: v7x
topology: tpu7x:2x2x1
jax: 0.10.0
libtpu: 0.0.40
codegen_flags: <defaults>
</compile_context>

<pallas_src>
import functools
import math

import jax
import jax.numpy as jnp
from jax import lax
from jax.experimental import pallas as pl
from jax.experimental.pallas import tpu as pltpu


_INV_SQRT2 = 0.7071067811865476
_VMEM_MARGIN = 6 << 20  # headroom for Mosaic internal scratch / semaphores


# --------------------------------------------------------------------------- #
# Kernels
# --------------------------------------------------------------------------- #
def _gelu(h, approximate):
    # h is f32 (v5e has no bf16 VPU/EUP path; f32 is correct everywhere).
    if approximate:
        # tanh form -> EUP (separate bundle slot, nearly free under MXU work).
        c = math.sqrt(2.0 / math.pi)
        return 0.5 * h * (1.0 + jnp.tanh(c * (h + 0.044715 * (h * h * h))))
    # Exact erf form: matches nn.GELU(approximate='none') (PyTorch default).
    return 0.5 * h * (1.0 + lax.erf(h * _INV_SQRT2))


def _mlp_kernel_resident(x_ref, w1_ref, w2_ref, o_ref, *, approximate):
    # Weights fully VMEM-resident: one fused step per row tile, no accumulator.
    # x_ref: (tm, C) bf16, w1_ref: (C, H) = W_fc^T, w2_ref: (H, C) = W_proj^T.
    h = jnp.dot(x_ref[...], w1_ref[...], preferred_element_type=jnp.float32)
    h = _gelu(h, approximate)
    o_ref[...] = jnp.dot(h.astype(w2_ref.dtype), w2_ref[...],
                         preferred_element_type=jnp.float32).astype(o_ref.dtype)
    # TODO(synk): Dropout(p=0.0) is identity; p>0 training dropout would need
    # pltpu.prng_seed / prng_random_bits masking here.


def _mlp_kernel_hstream(x_ref, w1_ref, w2_ref, o_ref, acc_ref, *, approximate):
    # Hidden dim streamed as a reduction grid axis (axis 1, "arbitrary").
    # x_ref: (tm, C), w1_ref: (C, th), w2_ref: (th, C), acc_ref: (tm, C) f32.
    k = pl.program_id(1)

    @pl.when(k == 0)
    def _init():
        acc_ref[...] = jnp.zeros_like(acc_ref)

    h = jnp.dot(x_ref[...], w1_ref[...], preferred_element_type=jnp.float32)
    h = _gelu(h, approximate)
    acc_ref[...] += jnp.dot(h.astype(w2_ref.dtype), w2_ref[...],
                            preferred_element_type=jnp.float32)

    @pl.when(k == pl.num_programs(1) - 1)
    def _finalize():
        o_ref[...] = acc_ref[...].astype(o_ref.dtype)


# --------------------------------------------------------------------------- #
# Tile / VMEM selection
# --------------------------------------------------------------------------- #
def _cdiv(a, b):
    return (a + b - 1) // b


def _round_up(x, m):
    return _cdiv(x, m) * m


def _pick_hidden_tile(h_dim, target, multiple=128):
    """Largest multiple of `multiple` dividing h_dim and <= target, else h_dim."""
    if h_dim <= target or h_dim % multiple != 0:
        return h_dim
    t = (min(target, h_dim) // multiple) * multiple
    while t >= multiple:
        if h_dim % t == 0:
            return t
        t -= multiple
    return h_dim


def _vmem_budget_bytes():
    """Generation-aware soft VMEM cap (~50 MiB on v7x, ~100 MiB on v5e/v6e)."""
    cap = 128 << 20
    try:
        info = pltpu.get_tpu_info()
        cap = int(getattr(info, "vmem_capacity_bytes", cap) or cap)
    except Exception:
        pass
    return int(0.78 * cap)


def _vmem_usage_bytes(tm, th, C, bpe, out_bpe, w_bufs, with_acc):
    use = 2 * tm * C * bpe                # x tile (double-buffered)
    use += w_bufs * 2 * th * C * bpe      # W_fc^T + W_proj^T tiles
    use += 2 * tm * C * out_bpe           # output tile (double-buffered)
    use += tm * th * (4 + bpe)            # GELU intermediate (f32 + bf16 copy)
    if with_acc:
        use += tm * C * 4                 # f32 accumulator scratch
    return use


def _choose_tiles(M, C, H, tm_req, th_req, bpe, out_bpe, budget, resident_w_bufs):
    tm = max(16, min(_round_up(tm_req, 16), _round_up(M, 16)))
    # v7x has 2 TensorCores: prefer >= 2 row tiles when there is enough work so
    # the "parallel" M axis can be sharded across both cores.
    if M > 256 and _cdiv(M, tm) < 2:
        tm = _round_up(_cdiv(M, 2), 16)

    # Option A: both weights fully VMEM-resident (th == H, constant block index,
    # DMA'd once for the whole call).
    t = tm
    while True:
        if _vmem_usage_bytes(t, H, C, bpe, out_bpe, resident_w_bufs, False) <= budget:
            return t, H, True
        if t <= 256:
            break
        t = max(256, _round_up(t // 2, 16))

    # Option B: stream weight slices along a reduction axis over H.
    th = _pick_hidden_tile(H, th_req)
    while (_vmem_usage_bytes(tm, th, C, bpe, out_bpe, 2, True) > budget
           and th > 128):
        new_th = _pick_hidden_tile(H, max(128, th // 2))
        if new_th >= th:
            break
        th = new_th
    while (_vmem_usage_bytes(tm, th, C, bpe, out_bpe, 2, True) > budget
           and tm > 128):
        tm = max(128, _round_up(tm // 2, 16))
    return tm, th, (th == H)


# --------------------------------------------------------------------------- #
# Forward
# --------------------------------------------------------------------------- #
def prepare_mlp_weights(w_fc, w_proj, compute_dtype=jnp.bfloat16):
    """One-time layout/dtype prep: PyTorch (out, in) weights -> transposed
    MXU-friendly bf16 so the kernel contracts lhs-last vs rhs-first dims."""
    w1t = jnp.asarray(w_fc).T.astype(compute_dtype)    # (C, H) = W_fc^T
    w2t = jnp.asarray(w_proj).T.astype(compute_dtype)  # (H, C) = W_proj^T
    return w1t, w2t


@functools.partial(
    jax.jit,
    static_argnames=("tm", "th", "gelu_approximate", "single_buffer_weights"))
def _mlp_forward_jit(x, w1t, w2t, *, tm, th, gelu_approximate,
                     single_buffer_weights):
    orig_shape = x.shape
    C = orig_shape[-1]
    H = w1t.shape[1]
    assert w1t.shape == (C, H), "w1t must be W_fc^T with shape (n_embd, 4*n_embd)"
    assert w2t.shape == (H, C), "w2t must be W_proj^T with shape (4*n_embd, n_embd)"

    compute_dtype = w1t.dtype
    out_dtype = x.dtype
    bpe = jnp.dtype(compute_dtype).itemsize
    out_bpe = jnp.dtype(out_dtype).itemsize

    M = 1
    for d in orig_shape[:-1]:
        M *= int(d)

    budget = _vmem_budget_bytes()
    resident_w_bufs = 1 if single_buffer_weights else 2
    tm, th, resident = _choose_tiles(M, C, H, tm, th, bpe, out_bpe,
                                     budget - _VMEM_MARGIN, resident_w_bufs)

    Mp = _round_up(M, tm)
    x2d = x.reshape(M, C).astype(compute_dtype)
    if Mp != M:
        x2d = jnp.pad(x2d, ((0, Mp - M), (0, 0)))

    w_bufs = resident_w_bufs if resident else 2
    usage = _vmem_usage_bytes(tm, th, C, bpe, out_bpe, w_bufs, not resident)
    vmem_limit = int(min(budget, max(usage + _VMEM_MARGIN, 32 << 20)))

    if resident:
        # Single-step fused kernel; weights loaded once and kept in VMEM.
        if single_buffer_weights:
            w1_spec = pl.BlockSpec((C, H), lambda i: (0, 0),
                                   pipeline_mode=pl.Buffered(1))
            w2_spec = pl.BlockSpec((H, C), lambda i: (0, 0),
                                   pipeline_mode=pl.Buffered(1))
        else:
            w1_spec = pl.BlockSpec((C, H), lambda i: (0, 0))
            w2_spec = pl.BlockSpec((H, C), lambda i: (0, 0))
        kernel = functools.partial(_mlp_kernel_resident,
                                   approximate=gelu_approximate)
        grid = (Mp // tm,)
        in_specs = [pl.BlockSpec((tm, C), lambda i: (i, 0)), w1_spec, w2_spec]
        out_specs = pl.BlockSpec((tm, C), lambda i: (i, 0))
        scratch_shapes = ()
        dim_sem = ("parallel",)
    else:
        kernel = functools.partial(_mlp_kernel_hstream,
                                   approximate=gelu_approximate)
        grid = (Mp // tm, H // th)
        in_specs = [
            pl.BlockSpec((tm, C), lambda i, k: (i, 0)),   # x rows (const over k)
            pl.BlockSpec((C, th), lambda i, k: (0, k)),   # W_fc^T slice
            pl.BlockSpec((th, C), lambda i, k: (k, 0)),   # W_proj^T slice
        ]
        out_specs = pl.BlockSpec((tm, C), lambda i, k: (i, 0))
        scratch_shapes = (pltpu.VMEM((tm, C), jnp.float32),)
        dim_sem = ("parallel", "arbitrary")

    out2d = pl.pallas_call(
        kernel,
        out_shape=jax.ShapeDtypeStruct((Mp, C), out_dtype),
        grid_spec=pltpu.PrefetchScalarGridSpec(
            num_scalar_prefetch=0,
            grid=grid,
            in_specs=in_specs,
            out_specs=out_specs,
            scratch_shapes=scratch_shapes,
        ),
        compiler_params=pltpu.CompilerParams(
            dimension_semantics=dim_sem,
            vmem_limit_bytes=vmem_limit,
        ),
    )(x2d, w1t, w2t)

    if Mp != M:
        out2d = out2d[:M]
    return out2d.reshape(orig_shape)


# Whether pipeline_mode=pl.Buffered(1) is usable on this JAX install; flipped
# off automatically if the first compile rejects it.
_weight_single_buffer_ok = hasattr(pl, "Buffered")


def mlp_forward_prepared(x, w1t, w2t, *, tm=1024, th=2048,
                         gelu_approximate=False):
    """x: (..., C); w1t/w2t from prepare_mlp_weights (already bf16, transposed)."""
    global _weight_single_buffer_ok
    if _weight_single_buffer_ok:
        try:
            return _mlp_forward_jit(x, w1t, w2t, tm=tm, th=th,
                                    gelu_approximate=gelu_approximate,
                                    single_buffer_weights=True)
        except Exception:
            # Fall back to default (double-buffered) weight blocks.
            _weight_single_buffer_ok = False
    return _mlp_forward_jit(x, w1t, w2t, tm=tm, th=th,
                            gelu_approximate=gelu_approximate,
                            single_buffer_weights=False)


def mlp_forward(x, w_fc, w_proj, *, compute_dtype=jnp.bfloat16, **kwargs):
    """Convenience wrapper taking PyTorch-layout weights: w_fc (4C, C),
    w_proj (C, 4C). For repeated calls, prepare the weights once instead."""
    w1t, w2t = prepare_mlp_weights(w_fc, w_proj, compute_dtype)
    return mlp_forward_prepared(x, w1t, w2t, **kwargs)


def mlp_reference(x, w_fc, w_proj, compute_dtype=jnp.bfloat16):
    """f32 reference mirroring the kernel's bf16-input / f32-accumulate math."""
    f32 = jnp.float32
    xb = x.astype(compute_dtype).astype(f32)
    w1 = w_fc.astype(compute_dtype).astype(f32)
    w2 = w_proj.astype(compute_dtype).astype(f32)
    h = jnp.einsum("btc,hc->bth", xb, w1)
    h = 0.5 * h * (1.0 + lax.erf(h * _INV_SQRT2))
    h = h.astype(compute_dtype).astype(f32)
    out = jnp.einsum("bth,ch->btc", h, w2)
    return out.astype(x.dtype)


if __name__ == "__main__":
    # Small GPT-like config: n_embd=128 -> hidden=512; batch=2, seq=64.
    # (C is a multiple of 128 so output stores are lane-dense.)
    B, T, C = 2, 64, 128
    H = 4 * C

    key = jax.random.PRNGKey(0)
    kx, k1, k2 = jax.random.split(key, 3)
    x = jax.random.normal(kx, (B, T, C), dtype=jnp.float32)
    # PyTorch nn.Linear stores weights as (out_features, in_features).
    w_fc = jax.random.normal(k1, (H, C), dtype=jnp.float32) * (1.0 / math.sqrt(C))
    w_proj = jax.random.normal(k2, (C, H), dtype=jnp.float32) * (1.0 / math.sqrt(H))

    # One-time weight layout/dtype prep (transpose + bf16 cast, outside the hot path).
    w1t, w2t = prepare_mlp_weights(w_fc, w_proj)

    out = mlp_forward_prepared(x, w1t, w2t)
    out = jax.block_until_ready(out)

    ref = mlp_reference(x, w_fc, w_proj)
    assert out.shape == (B, T, C)
    max_err = jnp.max(jnp.abs(out - ref))
    assert jnp.allclose(out, ref, atol=2e-2, rtol=2e-2), (
        f"mismatch vs reference (max abs err {max_err})")

    print("KERNEL_OK")
</pallas_src>

<mosaic_0001>
module attributes {stable_mosaic.version = 11 : i64} {
  func.func @_mlp_kernel_resident(%arg0: i32, %arg1: memref<128x128xbf16, #tpu.memory_space<vmem>>, %arg2: memref<128x512xbf16, #tpu.memory_space<vmem>>, %arg3: memref<512x128xbf16, #tpu.memory_space<vmem>>, %arg4: memref<128x128xf32, #tpu.memory_space<vmem>>) attributes {dimension_semantics = [#tpu.dimension_semantics<parallel>], iteration_bounds = array<i64: 1>, scalar_prefetch = 0 : i64, scratch_operands = 0 : i64, tpu.core_type = #tpu.core_type<tc>, window_params = [{transform_indices = @transform_0, window_bounds = array<i64: 128, 128>}, {pipeline_mode = #tpu.pipeline_mode<synchronous>, transform_indices = @transform_1, window_bounds = array<i64: 128, 512>}, {pipeline_mode = #tpu.pipeline_mode<synchronous>, transform_indices = @transform_2, window_bounds = array<i64: 512, 128>}, {transform_indices = @transform_3, window_bounds = array<i64: 128, 128>}]} {
    %c0 = arith.constant 0 : index
    %c0_0 = arith.constant 0 : index
    %0 = vector.load %arg1[%c0, %c0_0] : memref<128x128xbf16, #tpu.memory_space<vmem>>, vector<128x128xbf16>
    %c0_1 = arith.constant 0 : index
    %c0_2 = arith.constant 0 : index
    %1 = vector.load %arg2[%c0_1, %c0_2] : memref<128x512xbf16, #tpu.memory_space<vmem>>, vector<128x512xbf16>
    %cst = arith.constant dense<0.000000e+00> : vector<128x512xf32>
    %2 = tpu.matmul %0, %1, %cst {dimension_numbers = #tpu.dot_dimension_numbers<[1], [0], [0], [1], [0, 0, 1, 1], [], []>} : vector<128x128xbf16>, vector<128x512xbf16>, vector<128x512xf32> -> vector<128x512xf32>
    %cst_3 = arith.constant 5.000000e-01 : f32
    %3 = vector.broadcast %cst_3 : f32 to vector<128x512xf32>
    %4 = arith.mulf %3, %2 : vector<128x512xf32>
    %cst_4 = arith.constant 0.707106769 : f32
    %5 = vector.broadcast %cst_4 : f32 to vector<128x512xf32>
    %6 = arith.mulf %2, %5 : vector<128x512xf32>
    %7 = math.erf %6 : vector<128x512xf32>
    %cst_5 = arith.constant 1.000000e+00 : f32
    %8 = vector.broadcast %cst_5 : f32 to vector<128x512xf32>
    %9 = arith.addf %8, %7 : vector<128x512xf32>
    %10 = arith.mulf %4, %9 : vector<128x512xf32>
    %11 = arith.truncf %10 : vector<128x512xf32> to vector<128x512xbf16>
    %c0_6 = arith.constant 0 : index
    %c0_7 = arith.constant 0 : index
    %12 = vector.load %arg3[%c0_6, %c0_7] : memref<512x128xbf16, #tpu.memory_space<vmem>>, vector<512x128xbf16>
    %cst_8 = arith.constant dense<0.000000e+00> : vector<128x128xf32>
    %13 = tpu.matmul %11, %12, %cst_8 {dimension_numbers = #tpu.dot_dimension_numbers<[1], [0], [0], [1], [0, 0, 1, 1], [], []>} : vector<128x512xbf16>, vector<512x128xbf16>, vector<128x128xf32> -> vector<128x128xf32>
    %c0_9 = arith.constant 0 : index
    %c0_10 = arith.constant 0 : index
    %14 = vector.load %arg4[%c0_9, %c0_10] : memref<128x128xf32, #tpu.memory_space<vmem>>, vector<128x128xf32>
    tpu.vector_store %arg4[%c0_9, %c0_10], %13 {strides = array<i32>} : memref<128x128xf32, #tpu.memory_space<vmem>>, vector<128x128xf32>,
    return
  }
  func.func @transform_0(%arg0: i32) -> (i32, i32) {
    %c0_i32 = arith.constant 0 : i32
    %c0_i32_0 = arith.constant 0 : i32
    return %arg0, %c0_i32 : i32, i32
  }
  func.func @transform_1(%arg0: i32) -> (i32, i32) {
    %c0_i32 = arith.constant 0 : i32
    %c0_i32_0 = arith.constant 0 : i32
    %c0_i32_1 = arith.constant 0 : i32
    return %c0_i32, %c0_i32_0 : i32, i32
  }
  func.func @transform_2(%arg0: i32) -> (i32, i32) {
    %c0_i32 = arith.constant 0 : i32
    %c0_i32_0 = arith.constant 0 : i32
    %c0_i32_1 = arith.constant 0 : i32
    return %c0_i32, %c0_i32_0 : i32, i32
  }
  func.func @transform_3(%arg0: i32) -> (i32, i32) {
    %c0_i32 = arith.constant 0 : i32
    %c0_i32_0 = arith.constant 0 : i32
    return %arg0, %c0_i32 : i32, i32
  }
}

module attributes {stable_mosaic.version = 11 : i64} {
  func.func @_mlp_kernel_resident(%arg0: i32, %arg1: memref<128x128xbf16, #tpu.memory_space<vmem>>, %arg2: memref<128x512xbf16, #tpu.memory_space<vmem>>, %arg3: memref<512x128xbf16, #tpu.memory_space<vmem>>, %arg4: memref<128x128xf32, #tpu.memory_space<vmem>>) attributes {dimension_semantics = [#tpu.dimension_semantics<parallel>], iteration_bounds = array<i64: 1>, scalar_prefetch = 0 : i64, scratch_operands = 0 : i64, tpu.core_type = #tpu.core_type<tc>, window_params = [{transform_indices = @transform_0, window_bounds = array<i64: 128, 128>}, {pipeline_mode = #tpu.pipeline_mode<synchronous>, transform_indices = @transform_1, window_bounds = array<i64: 128, 512>}, {pipeline_mode = #tpu.pipeline_mode<synchronous>, transform_indices = @transform_2, window_bounds = array<i64: 512, 128>}, {transform_indices = @transform_3, window_bounds = array<i64: 128, 128>}]} {
    %c0 = arith.constant 0 : index
    %c0_0 = arith.constant 0 : index
    %0 = vector.load %arg1[%c0, %c0_0] : memref<128x128xbf16, #tpu.memory_space<vmem>>, vector<128x128xbf16>
    %c0_1 = arith.constant 0 : index
    %c0_2 = arith.constant 0 : index
    %1 = vector.load %arg2[%c0_1, %c0_2] : memref<128x512xbf16, #tpu.memory_space<vmem>>, vector<128x512xbf16>
    %cst = arith.constant dense<0.000000e+00> : vector<128x512xf32>
    %2 = tpu.matmul %0, %1, %cst {dimension_numbers = #tpu.dot_dimension_numbers<[1], [0], [0], [1], [0, 0, 1, 1], [], []>} : vector<128x128xbf16>, vector<128x512xbf16>, vector<128x512xf32> -> vector<128x512xf32>
    %cst_3 = arith.constant 5.000000e-01 : f32
    %3 = vector.broadcast %cst_3 : f32 to vector<128x512xf32>
    %4 = arith.mulf %3, %2 : vector<128x512xf32>
    %cst_4 = arith.constant 0.707106769 : f32
    %5 = vector.broadcast %cst_4 : f32 to vector<128x512xf32>
    %6 = arith.mulf %2, %5 : vector<128x512xf32>
    %7 = math.erf %6 : vector<128x512xf32>
    %cst_5 = arith.constant 1.000000e+00 : f32
    %8 = vector.broadcast %cst_5 : f32 to vector<128x512xf32>
    %9 = arith.addf %8, %7 : vector<128x512xf32>
    %10 = arith.mulf %4, %9 : vector<128x512xf32>
    %11 = arith.truncf %10 : vector<128x512xf32> to vector<128x512xbf16>
    %c0_6 = arith.constant 0 : index
    %c0_7 = arith.constant 0 : index
    %12 = vector.load %arg3[%c0_6, %c0_7] : memref<512x128xbf16, #tpu.memory_space<vmem>>, vector<512x128xbf16>
    %cst_8 = arith.constant dense<0.000000e+00> : vector<128x128xf32>
    %13 = tpu.matmul %11, %12, %cst_8 {dimension_numbers = #tpu.dot_dimension_numbers<[1], [0], [0], [1], [0, 0, 1, 1], [], []>} : vector<128x512xbf16>, vector<512x128xbf16>, vector<128x128xf32> -> vector<128x128xf32>
    %c0_9 = arith.constant 0 : index
    %c0_10 = arith.constant 0 : index
    %14 = vector.load %arg4[%c0_9, %c0_10] : memref<128x128xf32, #tpu.memory_space<vmem>>, vector<128x128xf32>
    tpu.vector_store %arg4[%c0_9, %c0_10], %13 {strides = array<i32>} : memref<128x128xf32, #tpu.memory_space<vmem>>, vector<128x128xf32>,
    return
  }
  func.func @transform_0(%arg0: i32) -> (i32, i32) {
    %c0_i32 = arith.constant 0 : i32
    %c0_i32_0 = arith.constant 0 : i32
    return %arg0, %c0_i32 : i32, i32
  }
  func.func @transform_1(%arg0: i32) -> (i32, i32) {
    %c0_i32 = arith.constant 0 : i32
    %c0_i32_0 = arith.constant 0 : i32
    %c0_i32_1 = arith.constant 0 : i32
    return %c0_i32, %c0_i32_0 : i32, i32
  }
  func.func @transform_2(%arg0: i32) -> (i32, i32) {
    %c0_i32 = arith.constant 0 : i32
    %c0_i32_0 = arith.constant 0 : i32
    %c0_i32_1 = arith.constant 0 : i32
    return %c0_i32, %c0_i32_0 : i32, i32
  }
  func.func @transform_3(%arg0: i32) -> (i32, i32) {
    %c0_i32 = arith.constant 0 : i32
    %c0_i32_0 = arith.constant 0 : i32
    return %arg0, %c0_i32 : i32, i32
  }
}

</mosaic_0001>

<bundles_post_ra>
// kernel: _mlp_forward_jit.1
= control target key start
LH: loop header
LB: loop body
LE: loop exit
PB: predicated region body
PF: predicated region fallthrough
CT: control target
= control target key end

     0   :  { %8 = vsyncpa [#allocation3], 0  ;;  %s2345_s0 = inlined_call_operand.vmem [shape: bf16[128,128], index: 0, kind: input, shape index: {}]   ;;  %s2346_s1 = inlined_call_operand.hbm [shape: bf16[128,512], index: 1, kind: input, shape index: {}]   ;;  %s2347_s2 = inlined_call_operand.hbm [shape: bf16[512,128], index: 2, kind: input, shape index: {}]   ;;  %s2348_s3 = inlined_call_operand.hbm [shape: f32[128,128], index: 3, kind: output, shape index: {}]  }
   0x1   :  { %9 = vsyncpa [#allocation6], 0 }
   0x2   :  { %10 = vsyncpa [#allocation4], 0  ;;  %s1860_s12 = smov [#allocation2]   ;;  %s1788_s16 = scalar_lea.hbm %s2346_s1, 4096 }
   0x3   :  { %s18_s13 = sshll.u32 %s1860_s12, 4  ;;  %p1789_p0 = scmp.ne.s32.totalorder %s2346_s1, %s1788_s16  ;;  %s19_s13 = int_to_ptr.vmem [resolvable:$true] %s18_s13 }
   0x4   :  { %p1792_p1 = scmp.lt.u32.totalorder %s1788_s16, %s2346_s1 }
   0x6   :  { %p1794_p2 = pnand %p1792_p1, %p1789_p0 }
   0x8   :  { %1797 = shalt.err (!%p1794_p2)
}
   0x9   :  { %s1798_s21 = scalar_lea.vmem %s19_s13, 4096  ;;  %p1803_p4 = scmp.lt.s32.totalorder %s19_s13, %s19_s13 }
   0xa   :  { %p1799_p3 = scmp.ne.s32.totalorder %s19_s13, %s1798_s21  ;;  %p1804_p5 = scmp.lt.s32.totalorder %s1798_s21, %s1798_s21 }
   0xc   :  { %p1805_p6 = por %p1804_p5, %p1803_p4 }
   0xe   :  { %p1806_p7 = pnand %p1805_p6, %p1799_p3 }
  0x10   :  { %1809 = shalt.err (!%p1806_p7)
}
  0x11   :  { %s1861_s22 = smov 256   ;;  %s1862_s23 = smov 16  }
  0x12   :  { %24 = dma.hbm_to_vmem [thread:$0]  %s2346_s1, 4096, %s19_s13, [#allocation3], %s1861_s22, %s1861_s22, %s1862_s23  }
  0x13   :  { %s1863_s26 = smov [#allocation5]   ;;  %s1810_s30 = scalar_lea.hbm %s2347_s2, 4096 }
  0x14   :  { %s30_s27 = sshll.u32 %s1863_s26, 4  ;;  %p1811_p8 = scmp.ne.s32.totalorder %s2347_s2, %s1810_s30  ;;  %s31_s27 = int_to_ptr.vmem [resolvable:$true] %s30_s27 }
  0x15   :  { %p1814_p9 = scmp.lt.u32.totalorder %s1810_s30, %s2347_s2 }
  0x17   :  { %p1816_p10 = pnand %p1814_p9, %p1811_p8 }
  0x19   :  { %1819 = shalt.err (!%p1816_p10)
}
  0x1a   :  { %s1820_s8 = scalar_lea.vmem %s31_s27, 4096  ;;  %p1825_p12 = scmp.lt.s32.totalorder %s31_s27, %s31_s27 }
  0x1b   :  { %p1821_p11 = scmp.ne.s32.totalorder %s31_s27, %s1820_s8  ;;  %p1826_p13 = scmp.lt.s32.totalorder %s1820_s8, %s1820_s8 }
  0x1d   :  { %p1827_p0 = por %p1826_p13, %p1825_p12 }
  0x1f   :  { %p1828_p1 = pnand %p1827_p0, %p1821_p11 }
  0x21   :  { %1831 = shalt.err (!%p1828_p1)
}
  0x22   :  { %s1864_s1 = smov 64   ;;  %s1865_s9 = smov 4  }
  0x23   :  { %36 = dma.hbm_to_vmem [thread:$0]  %s2347_s2, 4096, %s31_s27, [#allocation6], %s1864_s1, %s1864_s1, %s1865_s9  }
  0x24   :  { %1854 = dma.done.wait [#allocation3], 4096  }
  0x25   :  { %1855 = vsyncadd [#allocation3], 4294963200 }
  0x26   :  { %1856 = dma.done.wait [#allocation6], 4096  }
  0x27   :  { %1857 = vsyncadd [#allocation6], 4294963200  ;;  %v1866_v0 = vmov 0   ;;  %v1572_v1 = vld [vmem:[#allocation2 + $0x4] ss:$16 sps:$4 sm:$0xff]   ;;  %v1632_v38 = vld [vmem:[#allocation5 + $0x48] sm:$0xff]  }
  0x28   :  { %332 = vmatprep.mubr.bf16.mxu0 %v1866_v0  ;;  %445 = vmatprep.mubr.bf16.mxu1 %v1866_v0  ;;  %v1574_v2 = vld [vmem:[#allocation2 + $0xc] ss:$16 sps:$4 sm:$0xff]   ;;  %v1576_v3 = vld [vmem:[#allocation2] ss:$16 sps:$4 sm:$0xff]   ;;  %v1577_v4 = vld [vmem:[#allocation2 + $0x8] ss:$16 sps:$4 sm:$0xff]  }
  0x29   :  { %300 = vmatprep.subr.bf16.mxu0 %v1572_v1  ;;  %413 = vmatprep.subr.bf16.mxu1 %v1574_v2  ;;  %v1578_v5 = vld [vmem:[#allocation2 + $0x24] ss:$16 sps:$4 sm:$0xff]   ;;  %v1580_v6 = vld [vmem:[#allocation2 + $0x2c] ss:$16 sps:$4 sm:$0xff]   ;;  %v1582_v7 = vld [vmem:[#allocation2 + $0x20] ss:$16 sps:$4 sm:$0xff]  }
  0x2a   :  { %301 = vmatpush1.bf16.msra.mxu0 %v1576_v3  ;;  %414 = vmatpush1.bf16.msra.mxu1 %v1577_v4  ;;  %v1583_v8 = vld [vmem:[#allocation2 + $0x28] ss:$16 sps:$4 sm:$0xff]   ;;  %v1584_v9 = vld [vmem:[#allocation2 + $0x44] ss:$16 sps:$4 sm:$0xff]   ;;  %v1586_v10 = vld [vmem:[#allocation2 + $0x4c] ss:$16 sps:$4 sm:$0xff]  }
  0x2b   :  { %302 = vmatprep.subr.bf16.mxu0 %v1578_v5  ;;  %415 = vmatprep.subr.bf16.mxu1 %v1580_v6  ;;  %v1588_v11 = vld [vmem:[#allocation2 + $0x40] ss:$16 sps:$4 sm:$0xff]   ;;  %v1589_v12 = vld [vmem:[#allocation2 + $0x48] ss:$16 sps:$4 sm:$0xff]   ;;  %v1590_v13 = vld [vmem:[#allocation2 + $0x64] ss:$16 sps:$4 sm:$0xff]  }
  0x2c   :  { %v1592_v14 = vld [vmem:[#allocation2 + $0x6c] ss:$16 sps:$4 sm:$0xff]   ;;  %v1594_v15 = vld [vmem:[#allocation2 + $0x60] ss:$16 sps:$4 sm:$0xff]   ;;  %v1595_v16 = vld [vmem:[#allocation2 + $0x68] ss:$16 sps:$4 sm:$0xff]  }
  0x2d   :  { %v1596_v17 = vld [vmem:[#allocation2 + $0x84] ss:$16 sps:$4 sm:$0xff]   ;;  %v1598_v18 = vld [vmem:[#allocation2 + $0x8c] ss:$16 sps:$4 sm:$0xff]   ;;  %v1600_v19 = vld [vmem:[#allocation2 + $0x80] ss:$16 sps:$4 sm:$0xff]  }
  0x2e   :  { %303 = vmatpush1.bf16.msra.mxu0 %v1582_v7  ;;  %416 = vmatpush1.bf16.msra.mxu1 %v1583_v8  ;;  %v1601_v20 = vld [vmem:[#allocation2 + $0x88] ss:$16 sps:$4 sm:$0xff]   ;;  %v1602_v21 = vld [vmem:[#allocation2 + $0xa4] ss:$16 sps:$4 sm:$0xff]   ;;  %v1604_v22 = vld [vmem:[#allocation2 + $0xac] ss:$16 sps:$4 sm:$0xff]  }
  0x2f   :  { %304 = vmatprep.subr.bf16.mxu0 %v1584_v9  ;;  %417 = vmatprep.subr.bf16.mxu1 %v1586_v10  ;;  %v1606_v23 = vld [vmem:[#allocation2 + $0xa0] ss:$16 sps:$4 sm:$0xff]   ;;  %v1607_v24 = vld [vmem:[#allocation2 + $0xa8] ss:$16 sps:$4 sm:$0xff]   ;;  %v1608_v25 = vld [vmem:[#allocation2 + $0xc4] ss:$16 sps:$4 sm:$0xff]  }
  0x30   :  { %v1610_v26 = vld [vmem:[#allocation2 + $0xcc] ss:$16 sps:$4 sm:$0xff]   ;;  %v1612_v27 = vld [vmem:[#allocation2 + $0xc0] ss:$16 sps:$4 sm:$0xff]   ;;  %v1613_v28 = vld [vmem:[#allocation2 + $0xc8] ss:$16 sps:$4 sm:$0xff]  }
  0x31   :  { %v1614_v29 = vld [vmem:[#allocation2 + $0xe4] ss:$16 sps:$4 sm:$0xff]   ;;  %v1616_v30 = vld [vmem:[#allocation2 + $0xec] ss:$16 sps:$4 sm:$0xff]   ;;  %v1618_v31 = vld [vmem:[#allocation2 + $0xe0] ss:$16 sps:$4 sm:$0xff]  }
  0x32   :  { %305 = vmatpush1.bf16.msra.mxu0 %v1588_v11  ;;  %418 = vmatpush1.bf16.msra.mxu1 %v1589_v12  ;;  %v1619_v32 = vld [vmem:[#allocation2 + $0xe8] ss:$16 sps:$4 sm:$0xff]   ;;  %v1620_v33 = vld [vmem:[%s2345_s0] sm:$0xff]   ;;  %v1636_v43 = vld [vmem:[#allocation5 + $0x50] sm:$0xff]  }
  0x33   :  { %306 = vmatprep.subr.bf16.mxu0 %v1590_v13  ;;  %419 = vmatprep.subr.bf16.mxu1 %v1592_v14  ;;  %v1628_v34 = vld [vmem:[#allocation5 + $0x40] sm:$0xff]   ;;  %v1633_v39 = vld [vmem:[#allocation5 + $0xc8] sm:$0xff]   ;;  %v1637_v44 = vld [vmem:[#allocation5 + $0xd0] sm:$0xff]  }
  0x34   :  { %v1629_v35 = vld [vmem:[#allocation5 + $0xc0] sm:$0xff]   ;;  %v1634_v40 = vld [vmem:[#allocation5 + $0x8] sm:$0xff]   ;;  %v1638_v45 = vld [vmem:[#allocation5 + $0x10] sm:$0xff]  }
  0x35   :  { %v1630_v36 = vld [vmem:[#allocation5] sm:$0xff]   ;;  %v1621_v41 = vld [vmem:[%s2345_s0 + $0x8] sm:$0xff]   ;;  %v1639_v46 = vld [vmem:[#allocation5 + $0x90] sm:$0xff]  }
  0x36   :  { %307 = vmatpush1.bf16.msra.mxu0 %v1594_v15  ;;  %420 = vmatpush1.bf16.msra.mxu1 %v1595_v16  ;;  %v1631_v37 = vld [vmem:[#allocation5 + $0x80] sm:$0xff]   ;;  %v1635_v42 = vld [vmem:[#allocation5 + $0x88] sm:$0xff]   ;;  %v1640_v47 = vld [vmem:[#allocation5 + $0x58] sm:$0xff]  }
  0x37   :  { %308 = vmatprep.subr.bf16.mxu0 %v1596_v17  ;;  %421 = vmatprep.subr.bf16.mxu1 %v1598_v18  ;;  %v1641_v48 = vld [vmem:[#allocation5 + $0xd8] sm:$0xff]   ;;  %v1622_v50 = vld [vmem:[%s2345_s0 + $0x10] sm:$0xff]   ;;  %v1644_v52 = vld [vmem:[#allocation5 + $0x60] sm:$0xff]  }
  0x38   :  { %v1642_v49 = vld [vmem:[#allocation5 + $0x18] sm:$0xff]   ;;  %v1645_v53 = vld [vmem:[#allocation5 + $0xe0] sm:$0xff]   ;;  %v1648_v56 = vld [vmem:[#allocation5 + $0x68] sm:$0xff]  }
  0x39   :  { %v1643_v51 = vld [vmem:[#allocation5 + $0x98] sm:$0xff]   ;;  %v1646_v54 = vld [vmem:[#allocation5 + $0x20] sm:$0xff]   ;;  %v1649_v57 = vld [vmem:[#allocation5 + $0xe8] sm:$0xff]  }
  0x3a   :  { %309 = vmatpush1.bf16.msra.mxu0 %v1600_v19  ;;  %422 = vmatpush1.bf16.msra.mxu1 %v1601_v20  ;;  %v1647_v55 = vld [vmem:[#allocation5 + $0xa0] sm:$0xff]   ;;  %v1623_v58 = vld [vmem:[%s2345_s0 + $0x18] sm:$0xff]   ;;  %v1625_v60 = vld [vmem:[%s2345_s0 + $0x28] sm:$0xff]  }
  0x3b   :  { %310 = vmatprep.subr.bf16.mxu0 %v1602_v21  ;;  %423 = vmatprep.subr.bf16.mxu1 %v1604_v22  ;;  %v1624_v59 = vld [vmem:[%s2345_s0 + $0x20] sm:$0xff]   ;;  %v1626_v61 = vld [vmem:[%s2345_s0 + $0x30] sm:$0xff]   ;;  %v1627_v62 = vld [vmem:[%s2345_s0 + $0x38] sm:$0xff]   ;;  %s1867_s0 = smov [#allocation7]  }
  0x3c   :  { %v1650_v63 = vld [vmem:[#allocation5 + $0x28] sm:$0xff]   ;;  %v1652_v2 = vld [vmem:[#allocation5 + $0x70] sm:$0xff]   ;;  %v1656_v6 = vld [vmem:[#allocation5 + $0x78] sm:$0xff]   ;;  %s1349_s27 = sshll.u32 %s1867_s0, 4  ;;  %s1350_s27 = int_to_ptr.vmem [resolvable:$true] %s1349_s27 }
  0x3d   :  { %v1651_v1 = vld [vmem:[#allocation5 + $0xa8] sm:$0xff]   ;;  %v1653_v3 = vld [vmem:[#allocation5 + $0xf0] sm:$0xff]   ;;  %v1658_v7 = vld [vmem:[#allocation5 + $0x38] sm:$0xff]   ;;  %s1832_s28 = scalar_lea.vmem %s1350_s27, 2048  ;;  %p1837_p3 = scmp.lt.s32.totalorder %s1350_s27, %s1350_s27 }
  0x3e   :  { %311 = vmatpush1.bf16.msra.mxu0 %v1606_v23  ;;  %424 = vmatpush1.bf16.msra.mxu1 %v1607_v24  ;;  %v1654_v4 = vld [vmem:[#allocation5 + $0x30] sm:$0xff]   ;;  %v1659_v8 = vld [vmem:[#allocation5 + $0xb8] sm:$0xff]   ;;  %p1833_p2 = scmp.ne.s32.totalorder %s1350_s27, %s1832_s28  ;;  %p1838_p4 = scmp.lt.s32.totalorder %s1832_s28, %s1832_s28 }
  0x3f   :  { %312 = vmatprep.subr.bf16.mxu0 %v1608_v25  ;;  %425 = vmatprep.subr.bf16.mxu1 %v1610_v26  ;;  %v1655_v5 = vld [vmem:[#allocation5 + $0xb0] sm:$0xff]  }
  0x40   :  { %p1839_p5 = por %p1838_p4, %p1837_p3 }
  0x42   :  { %313 = vmatpush1.bf16.msra.mxu0 %v1612_v27  ;;  %426 = vmatpush1.bf16.msra.mxu1 %v1613_v28  ;;  %p1840_p6 = pnand %p1839_p5, %p1833_p2 }
  0x43   :  { %314 = vmatprep.subr.bf16.mxu0 %v1614_v29  ;;  %427 = vmatprep.subr.bf16.mxu1 %v1616_v30 }
  0x46   :  { %315 = vmatpush1.bf16.msra.mxu0 %v1618_v31  ;;  %428 = vmatpush1.bf16.msra.mxu1 %v1619_v32 }
  0x47   :  { %1434 = vmatprep.subr.bf16.mxu0 %v1628_v34  ;;  %1498 = vmatprep.subr.bf16.mxu1 %v1629_v35 }
  0x49   :  { %333 = vmatmul.mubr.bf16.vlgmr.msra.gmra.mrb[0].mxu0 %v1620_v33  ;;  %446 = vmatmul.mubr.bf16.vlgmr.msra.gmra.mrb[0].mxu1 %v1620_v33 }
  0x4a   :  { %342 = vmatprep.mubr.bf16.mxu0 %v1866_v0  ;;  %455 = vmatprep.mubr.bf16.mxu1 %v1866_v0 }
  0x4b   :  { %1435 = vmatpush3.bf16.msra.mxu0 %v1630_v36  ;;  %1499 = vmatpush3.bf16.msra.mxu1 %v1631_v37 }
  0x4c   :  { %1436 = vmatprep.subr.bf16.mxu0 %v1632_v38  ;;  %1500 = vmatprep.subr.bf16.mxu1 %v1633_v39 }
  0x4f   :  { %1437 = vmatpush3.bf16.msra.mxu0 %v1634_v40  ;;  %1501 = vmatpush3.bf16.msra.mxu1 %v1635_v42 }
  0x50   :  { %1438 = vmatprep.subr.bf16.mxu0 %v1636_v43  ;;  %1502 = vmatprep.subr.bf16.mxu1 %v1637_v44 }
  0x51   :  { %343 = vmatmul.mubr.bf16.gmra.mrb[4].mxu0 %v1621_v41  ;;  %456 = vmatmul.mubr.bf16.gmra.mrb[4].mxu1 %v1621_v41 }
  0x52   :  { %352 = vmatprep.mubr.bf16.mxu0 %v1866_v0  ;;  %465 = vmatprep.mubr.bf16.mxu1 %v1866_v0 }
  0x53   :  { %1439 = vmatpush3.bf16.msra.mxu0 %v1638_v45  ;;  %1503 = vmatpush3.bf16.msra.mxu1 %v1639_v46 }
  0x54   :  { %1440 = vmatprep.subr.bf16.mxu0 %v1640_v47  ;;  %1504 = vmatprep.subr.bf16.mxu1 %v1641_v48 }
  0x57   :  { %1441 = vmatpush3.bf16.msra.mxu0 %v1642_v49  ;;  %1505 = vmatpush3.bf16.msra.mxu1 %v1643_v51 }
  0x58   :  { %1442 = vmatprep.subr.bf16.mxu0 %v1644_v52  ;;  %1506 = vmatprep.subr.bf16.mxu1 %v1645_v53 }
  0x59   :  { %353 = vmatmul.mubr.bf16.gmra.mrb[8].mxu0 %v1622_v50  ;;  %466 = vmatmul.mubr.bf16.gmra.mrb[8].mxu1 %v1622_v50 }
  0x5a   :  { %362 = vmatprep.mubr.bf16.mxu0 %v1866_v0  ;;  %475 = vmatprep.mubr.bf16.mxu1 %v1866_v0 }
  0x5b   :  { %1443 = vmatpush3.bf16.msra.mxu0 %v1646_v54  ;;  %1507 = vmatpush3.bf16.msra.mxu1 %v1647_v55 }
  0x5c   :  { %1444 = vmatprep.subr.bf16.mxu0 %v1648_v56  ;;  %1508 = vmatprep.subr.bf16.mxu1 %v1649_v57 }
  0x5f   :  { %1445 = vmatpush3.bf16.msra.mxu0 %v1650_v63  ;;  %1509 = vmatpush3.bf16.msra.mxu1 %v1651_v1 }
  0x60   :  { %1446 = vmatprep.subr.bf16.mxu0 %v1652_v2  ;;  %1510 = vmatprep.subr.bf16.mxu1 %v1653_v3 }
  0x61   :  { %363 = vmatmul.mubr.bf16.gmra.mrb[12].mxu0 %v1623_v58  ;;  %476 = vmatmul.mubr.bf16.gmra.mrb[12].mxu1 %v1623_v58 }
  0x62   :  { %372 = vmatprep.mubr.bf16.mxu0 %v1866_v0  ;;  %485 = vmatprep.mubr.bf16.mxu1 %v1866_v0 }
  0x63   :  { %1447 = vmatpush3.bf16.msra.mxu0 %v1654_v4  ;;  %1511 = vmatpush3.bf16.msra.mxu1 %v1655_v5 }
  0x64   :  { %1448 = vmatprep.subr.bf16.mxu0 %v1656_v6 }
  0x67   :  { %1449 = vmatpush3.bf16.msra.mxu0 %v1658_v7 }
  0x69   :  { %373 = vmatmul.mubr.bf16.gmra.mrb[16].mxu0 %v1624_v59  ;;  %486 = vmatmul.mubr.bf16.gmra.mrb[16].mxu1 %v1624_v59 }
  0x6a   :  { %382 = vmatprep.mubr.bf16.mxu0 %v1866_v0  ;;  %495 = vmatprep.mubr.bf16.mxu1 %v1866_v0 }
  0x71   :  { %383 = vmatmul.mubr.bf16.gmra.mrb[20].mxu0 %v1625_v60  ;;  %496 = vmatmul.mubr.bf16.gmra.mrb[20].mxu1 %v1625_v60 }
  0x72   :  { %392 = vmatprep.mubr.bf16.mxu0 %v1866_v0  ;;  %505 = vmatprep.mubr.bf16.mxu1 %v1866_v0 }
  0x79   :  { %393 = vmatmul.mubr.bf16.gmra.mrb[24].mxu0 %v1626_v61  ;;  %506 = vmatmul.mubr.bf16.gmra.mrb[24].mxu1 %v1626_v61 }
  0x7a   :  { %402 = vmatprep.mubr.bf16.mxu0 %v1866_v0  ;;  %515 = vmatprep.mubr.bf16.mxu1 %v1866_v0  ;;  %v1657_v0 = vld [vmem:[#allocation5 + $0xf8] sm:$0xff]  }
  0x7b   :  { %1512 = vmatprep.subr.bf16.mxu1 %v1657_v0 }
  0x7c   :  { %1513 = vmatpush3.bf16.msra.mxu1 %v1659_v8 }
  0x81   :  { %403 = vmatmul.mubr.bf16.gmra.mrb[28].mxu0 %v1627_v62  ;;  %516 = vmatmul.mubr.bf16.gmra.mrb[28].mxu1 %v1627_v62 }
 0x11c   :  { %v334_v9 = vpop.f32.mrb[0].mxu0  ;;  %v447_v10 = vpop.f32.mrb[0].mxu1 }
 0x11d   :  { %v590_v11 = vmul.f32 0.70710677, %v334_v9  ;;  %v592_v12 = vmul.f32 0.70710677, %v447_v10  ;;  %v336_v13 = vpop.f32.mrb[1].mxu0  ;;  %v449_v14 = vpop.f32.mrb[1].mxu1 }
 0x11e   :  { %v591_v15 = vmul.f32 0.70710677, %v336_v13  ;;  %v338_v16 = vpop.f32.mrb[2].mxu0  ;;  %v451_v17 = vpop.f32.mrb[2].mxu1  ;;  %v593_v18 = vmul.f32 0.70710677, %v449_v14 }
 0x11f   :  { %1660 = verf.f32 %v590_v11  ;;  %v594_v19 = vmul.f32 0.70710677, %v338_v16  ;;  %v340_v20 = vpop.f32.mrb[3].mxu0  ;;  %v596_v21 = vmul.f32 0.70710677, %v451_v17  ;;  %v453_v22 = vpop.f32.mrb[3].mxu1 }
 0x120   :  { %1662 = verf.f32 %v592_v12  ;;  %v595_v23 = vmul.f32 0.70710677, %v340_v20  ;;  %v597_v24 = vmul.f32 0.70710677, %v453_v22  ;;  %v526_v33 = vmul.f32 0.5, %v334_v9 }
 0x121   :  { %1664 = verf.f32 %v591_v15  ;;  %v528_v34 = vmul.f32 0.5, %v447_v10  ;;  %v1954_v38 = vmul.f32 0.5, %v336_v13  ;;  %v529_v43 = vmul.f32 0.5, %v449_v14 }
 0x122   :  { %1666 = verf.f32 %v593_v18  ;;  %v530_v44 = vmul.f32 0.5, %v338_v16  ;;  %v532_v47 = vmul.f32 0.5, %v451_v17  ;;  %v1956_v48 = vmul.f32 0.5, %v340_v20 }
 0x123   :  { %1668 = verf.f32 %v594_v19  ;;  %v1958_v51 = vmul.f32 0.5, %v453_v22 }
 0x124   :  { %1670 = verf.f32 %v596_v21  ;;  %v344_v25 = vpop.f32.mrb[4].mxu0  ;;  %v457_v26 = vpop.f32.mrb[4].mxu1 }
 0x125   :  { %1672 = verf.f32 %v595_v23  ;;  %v598_v27 = vmul.f32 0.70710677, %v344_v25  ;;  %v346_v28 = vpop.f32.mrb[5].mxu0  ;;  %v459_v29 = vpop.f32.mrb[5].mxu1  ;;  %v600_v30 = vmul.f32 0.70710677, %v457_v26 }
 0x126   :  { %1674 = verf.f32 %v597_v24  ;;  %v599_v31 = vmul.f32 0.70710677, %v346_v28  ;;  %v348_v32 = vpop.f32.mrb[6].mxu0  ;;  %v601_v35 = vmul.f32 0.70710677, %v459_v29  ;;  %v461_v36 = vpop.f32.mrb[6].mxu1 }
 0x127   :  { %1676 = verf.f32 %v598_v27  ;;  %v350_v37 = vpop.f32.mrb[7].mxu0  ;;  %v602_v39 = vmul.f32 0.70710677, %v348_v32  ;;  %v604_v40 = vmul.f32 0.70710677, %v461_v36  ;;  %v463_v41 = vpop.f32.mrb[7].mxu1 }
 0x128   :  { %1678 = verf.f32 %v600_v30  ;;  %v603_v45 = vmul.f32 0.70710677, %v350_v37  ;;  %v605_v49 = vmul.f32 0.70710677, %v463_v41  ;;  %v1960_v52 = vmul.f32 0.5, %v344_v25 }
 0x129   :  { %v1661_v42 = vpop.eup %1660  ;;  %1680 = verf.f32 %v599_v31  ;;  %v1962_v53 = vmul.f32 0.5, %v457_v26  ;;  %v1964_v56 = vmul.f32 0.5, %v346_v28  ;;  %v1966_v57 = vmul.f32 0.5, %v459_v29 }
 0x12a   :  { %v1663_v46 = vpop.eup %1662  ;;  %1682 = verf.f32 %v601_v35  ;;  %v718_v55 = vadd.f32 1.0, %v1661_v42  ;;  %v1968_v62 = vmul.f32 0.5, %v348_v32  ;;  %v1970_v63 = vmul.f32 0.5, %v461_v36 }
 0x12b   :  { %v1665_v50 = vpop.eup %1664  ;;  %1684 = verf.f32 %v602_v39  ;;  %v720_v61 = vadd.f32 1.0, %v1663_v46  ;;  %v1972_v5 = vmul.f32 0.5, %v350_v37  ;;  %v1990_v26 = vmul.f32 0.5, %v463_v41 }
 0x12c   :  { %v1667_v54 = vpop.eup %1666  ;;  %1686 = verf.f32 %v604_v40  ;;  %v354_v58 = vpop.f32.mrb[8].mxu0  ;;  %v719_v9 = vadd.f32 1.0, %v1665_v50  ;;  %v1980_v15 = vmul.f32 %v718_v55, %v526_v33 }
 0x12d   :  { %v467_v59 = vpop.f32.mrb[8].mxu1  ;;  %v1669_v60 = vpop.eup %1668  ;;  %1688 = verf.f32 %v603_v45  ;;  %v606_v6 = vmul.f32 0.70710677, %v354_v58  ;;  %v721_v16 = vadd.f32 1.0, %v1667_v54  ;;  %v1984_v19 = vmul.f32 %v720_v61, %v528_v34 }
 0x12e   :  { %v356_v1 = vpop.f32.mrb[9].mxu0  ;;  %v469_v2 = vpop.f32.mrb[9].mxu1  ;;  %v722_v4 = vadd.f32 1.0, %v1669_v60  ;;  %1690 = verf.f32 %v605_v49  ;;  %v608_v11 = vmul.f32 0.70710677, %v467_v59  ;;  %v783_v28 = vmul.f32 %v719_v9, %v1954_v38 }
 0x12f   :  { %v1671_v3 = vpop.eup %1670  ;;  %v358_v0 = vpop.f32.mrb[10].mxu0  ;;  %1692 = verf.f32 %v606_v6  ;;  %v607_v22 = vmul.f32 0.70710677, %v356_v1  ;;  %v1995_v31 = vmul.f32 0.5, %v354_v58  ;;  %v785_v33 = vmul.f32 %v721_v16, %v529_v43 }
 0x130   :  { %v1974_v7 = vpop.f32.mrb[10].mxu1  ;;  %v1673_v8 = vpop.eup %1672  ;;  %v724_v10 = vadd.f32 1.0, %v1671_v3  ;;  %v1982_v17 = vmul.f32 %v722_v4, %v530_v44  ;;  %1694 = verf.f32 %v608_v11  ;;  %v609_v35 = vmul.f32 0.70710677, %v469_v2 }
 0x131   :  { %v1976_v12 = vpop.f32.mrb[11].mxu0  ;;  %v1978_v13 = vpop.f32.mrb[11].mxu1  ;;  %v723_v21 = vadd.f32 1.0, %v1673_v8  ;;  %1696 = verf.f32 %v607_v22  ;;  %v2002_v41 = vmul.f32 0.5, %v467_v59  ;;  %v2004_v38 = vmul.f32 0.5, %v356_v1 }
 0x132   :  { %v1675_v14 = vpop.eup %1674  ;;  %v1986_v20 = vmul.f32 %v724_v10, %v532_v47  ;;  %v846_v24 = vpack.c.bf16 %v1982_v17, %v1980_v15  ;;  %v610_v42 = vmul.f32 0.70710677, %v358_v0  ;;  %v2011_v47 = vmul.f32 0.5, %v469_v2 }
 0x133   :  { %v1677_v18 = vpop.eup %1676  ;;  %v725_v25 = vadd.f32 1.0, %v1675_v14  ;;  %v787_v40 = vmul.f32 %v723_v21, %v1956_v48  ;;  %1698 = verf.f32 %v609_v35  ;;  %v612_v49 = vmul.f32 0.70710677, %v1974_v7 }
 0x134   :  { %v1679_v23 = vpop.eup %1678  ;;  %v848_v29 = vpack.c.bf16 %v1986_v20, %v1984_v19  ;;  %v726_v30 = vadd.f32 1.0, %v1677_v18  ;;  %v1997_v36 = vpop.f32.mrb[12].mxu0  ;;  %1700 = verf.f32 %v610_v42  ;;  %v2028_v2 = vmul.f32 0.5, %v358_v0 }
 0x135   :  { %v1681_v27 = vpop.eup %1680  ;;  %v728_v34 = vadd.f32 1.0, %v1679_v23  ;;  %v1999_v37 = vpop.f32.mrb[12].mxu1  ;;  %v789_v46 = vmul.f32 %v725_v25, %v1958_v51  ;;  %1702 = verf.f32 %v612_v49  ;;  %v611_v3 = vmul.f32 0.70710677, %v1976_v12 }
 0x136   :  { %v1683_v32 = vpop.eup %1682  ;;  %v2006_v44 = vpop.f32.mrb[13].mxu0  ;;  %v2019_v55 = vmul.f32 %v726_v30, %v1960_v52  ;;  %v727_v58 = vadd.f32 1.0, %v1681_v27  ;;  %v613_v8 = vmul.f32 0.70710677, %v1978_v13  ;;  %v847_v11 = vpack.c.bf16 %v787_v40, %v783_v28 }
 0x137   :  { %v1685_v39 = vpop.eup %1684  ;;  %v2008_v45 = vpop.f32.mrb[13].mxu1  ;;  %v729_v59 = vadd.f32 1.0, %v1683_v32  ;;  %v2026_v1 = vmul.f32 %v728_v34, %v1962_v53  ;;  %1704 = verf.f32 %v611_v3  ;;  %v849_v14 = vpack.c.bf16 %v789_v46, %v785_v33 }
 0x138   :  { %v1687_v43 = vpop.eup %1686  ;;  %v2014_v50 = vpop.f32.mrb[14].mxu0  ;;  %v730_v4 = vadd.f32 1.0, %v1685_v39  ;;  %v791_v16 = vmul.f32 %v727_v58, %v1964_v56  ;;  %v2037_v0 = vmul.f32 0.5, %v1974_v7  ;;  %1706 = verf.f32 %v613_v8  ;;  %1166 = vmatprep.mubr.bf16.mxu0 %v847_v11 }
 0x139   :  { %v2016_v48 = vpop.f32.mrb[14].mxu1  ;;  %v1689_v54 = vpop.eup %1688  ;;  %v732_v6 = vadd.f32 1.0, %v1687_v43  ;;  %v2034_v53 = vmul.f32 %v729_v59, %v1966_v57  ;;  %v2040_v20 = vmul.f32 0.5, %v1976_v12  ;;  %1263 = vmatprep.mubr.bf16.mxu1 %v849_v14  ;;  %v614_v21 = vmul.f32 0.70710677, %v1997_v36  ;;  %1167 = vmatmul.mubr.bf16.vlgmr.msra.gmra.mrb[32].mxu0 %v846_v24 }
 0x13a   :  { %v2021_v60 = vpop.f32.mrb[15].mxu0  ;;  %v2023_v61 = vpop.f32.mrb[15].mxu1  ;;  %v731_v52 = vadd.f32 1.0, %v1689_v54  ;;  %v616_v22 = vmul.f32 0.70710677, %v1999_v37  ;;  %v2045_v56 = vmul.f32 %v730_v4, %v1968_v62  ;;  %v2051_v7 = vmul.f32 0.5, %v1978_v13  ;;  %1264 = vmatmul.mubr.bf16.vlgmr.msra.gmra.mrb[32].mxu1 %v848_v29 }
 0x13b   :  { %v1691_v51 = vpop.eup %1690  ;;  %v2048_v57 = vmul.f32 %v732_v6, %v1970_v63  ;;  %v615_v12 = vmul.f32 0.70710677, %v2006_v44  ;;  %1708 = verf.f32 %v614_v21  ;;  %v617_v13 = vmul.f32 0.70710677, %v2008_v45 }
 0x13c   :  { %v1693_v9 = vpop.eup %1692  ;;  %v733_v10 = vadd.f32 1.0, %v1691_v51  ;;  %v2057_v23 = vpop.f32.mrb[16].mxu0  ;;  %v795_v62 = vmul.f32 %v731_v52, %v1972_v5  ;;  %v2069_v17 = vmul.f32 0.5, %v1997_v36  ;;  %1710 = verf.f32 %v616_v22 }
 0x13d   :  { %v1695_v18 = vpop.eup %1694  ;;  %v734_v19 = vadd.f32 1.0, %v1693_v9  ;;  %v2059_v25 = vpop.f32.mrb[16].mxu1  ;;  %v618_v24 = vmul.f32 0.70710677, %v2014_v50  ;;  %v2080_v33 = vmul.f32 0.5, %v1999_v37  ;;  %1712 = verf.f32 %v615_v12 }
 0x13e   :  { %v1697_v27 = vpop.eup %1696  ;;  %v797_v63 = vmul.f32 %v733_v10, %v1990_v26  ;;  %v2064_v28 = vpop.f32.mrb[17].mxu0  ;;  %v736_v15 = vadd.f32 1.0, %v1695_v18  ;;  %v620_v34 = vmul.f32 0.70710677, %v2016_v48  ;;  %v2088_v42 = vmul.f32 0.5, %v2006_v44 }
 0x13f   :  { %v2066_v30 = vpop.f32.mrb[17].mxu1  ;;  %v2072_v29 = vpop.f32.mrb[18].mxu0  ;;  %v2077_v26 = vmul.f32 %v734_v19, %v1995_v31  ;;  %v735_v40 = vadd.f32 1.0, %v1697_v27  ;;  %1714 = verf.f32 %v617_v13  ;;  %v619_v43 = vmul.f32 0.70710677, %v2021_v60 }
 0x140   :  { %v2074_v32 = vpop.f32.mrb[18].mxu1  ;;  %v1699_v5 = vpop.eup %1698  ;;  %v2092_v46 = vmul.f32 0.5, %v2008_v45  ;;  %1716 = verf.f32 %v618_v24  ;;  %v621_v37 = vmul.f32 0.70710677, %v2023_v61  ;;  %v851_v49 = vpack.c.bf16 %v795_v62, %v791_v16 }
 0x141   :  { %v2083_v35 = vpop.f32.mrb[19].mxu0  ;;  %v2085_v36 = vpop.f32.mrb[19].mxu1  ;;  %v2096_v54 = vmul.f32 %v736_v15, %v2002_v41  ;;  %v2099_v58 = vmul.f32 0.5, %v2014_v50  ;;  %1718 = verf.f32 %v620_v34  ;;  %v853_v44 = vpack.c.bf16 %v797_v63, %v2034_v53 }
 0x142   :  { %v1701_v39 = vpop.eup %1700  ;;  %v737_v51 = vadd.f32 1.0, %v1699_v5  ;;  %v2103_v3 = vmul.f32 0.5, %v2016_v48  ;;  %1720 = verf.f32 %v619_v43  ;;  %1174 = vmatprep.mubr.bf16.mxu0 %v851_v49  ;;  %v622_v45 = vmul.f32 0.70710677, %v2057_v23 }
 0x143   :  { %v1703_v31 = vpop.eup %1702  ;;  %v2111_v50 = vmul.f32 %v735_v40, %v2004_v38  ;;  %v738_v52 = vadd.f32 1.0, %v1701_v39  ;;  %1722 = verf.f32 %v621_v37  ;;  %1271 = vmatprep.mubr.bf16.mxu1 %v853_v44  ;;  %v624_v11 = vmul.f32 0.70710677, %v2059_v25 }
 0x144   :  { %v1705_v59 = vpop.eup %1704  ;;  %v2106_v4 = vpop.f32.mrb[20].mxu0  ;;  %v740_v8 = vadd.f32 1.0, %v1703_v31  ;;  %1724 = verf.f32 %v622_v45  ;;  %v850_v14 = vpack.c.bf16 %v2045_v56, %v2019_v55  ;;  %v2125_v18 = vmul.f32 0.5, %v2021_v60 }
 0x145   :  { %v2108_v6 = vpop.f32.mrb[20].mxu1  ;;  %v1707_v41 = vpop.eup %1706  ;;  %v739_v10 = vadd.f32 1.0, %v1705_v59  ;;  %v852_v19 = vpack.c.bf16 %v2048_v57, %v2026_v1  ;;  %v623_v21 = vmul.f32 0.70710677, %v2064_v28  ;;  %v801_v55 = vmul.f32 %v737_v51, %v2011_v47 }
 0x146   :  { %v2113_v9 = vpop.f32.mrb[21].mxu0  ;;  %v2115_v48 = vpop.f32.mrb[21].mxu1  ;;  %v741_v38 = vadd.f32 1.0, %v1707_v41  ;;  %v2136_v56 = vmul.f32 0.5, %v2023_v61  ;;  %1726 = verf.f32 %v624_v11  ;;  %1175 = vmatmul.mubr.bf16.gmra.mrb[36].mxu0 %v850_v14  ;;  %v625_v60 = vmul.f32 0.70710677, %v2066_v30 }
 0x147   :  { %v2120_v16 = vpop.f32.mrb[22].mxu0  ;;  %v2122_v53 = vpop.f32.mrb[22].mxu1  ;;  %v2140_v63 = vmul.f32 %v738_v52, %v2028_v2  ;;  %v2143_v1 = vmul.f32 0.5, %v2057_v23  ;;  %1272 = vmatmul.mubr.bf16.gmra.mrb[36].mxu1 %v852_v19  ;;  %1728 = verf.f32 %v623_v21  ;;  %v626_v57 = vmul.f32 0.70710677, %v2072_v29 }
 0x148   :  { %v2130_v22 = vpop.f32.mrb[23].mxu0  ;;  %v2132_v12 = vpop.f32.mrb[23].mxu1  ;;  %v804_v47 = vmul.f32 %v740_v8, %v2037_v0  ;;  %v803_v61 = vmul.f32 %v739_v10, %v2040_v20  ;;  %v2149_v15 = vmul.f32 0.5, %v2059_v25  ;;  %v628_v24 = vmul.f32 0.70710677, %v2074_v32 }
 0x149   :  { %v1709_v27 = vpop.eup %1708  ;;  %v805_v2 = vmul.f32 %v741_v38, %v2051_v7  ;;  %v2154_v23 = vmul.f32 0.5, %v2064_v28  ;;  %v2157_v34 = vmul.f32 0.5, %v2066_v30  ;;  %1730 = verf.f32 %v625_v60 }
 0x14a   :  { %v1711_v62 = vpop.eup %1710  ;;  %v742_v40 = vadd.f32 1.0, %v1709_v27  ;;  %1732 = verf.f32 %v626_v57  ;;  %v627_v20 = vmul.f32 0.70710677, %v2083_v35  ;;  %v2165_v7 = vmul.f32 0.5, %v2072_v29 }
 0x14b   :  { %v1713_v13 = vpop.eup %1712  ;;  %v744_v0 = vadd.f32 1.0, %v1711_v62  ;;  %1734 = verf.f32 %v628_v24  ;;  %v629_v28 = vmul.f32 0.70710677, %v2085_v36  ;;  %v2173_v51 = vmul.f32 0.5, %v2074_v32 }
 0x14c   :  { %v1715_v5 = vpop.eup %1714  ;;  %v2160_v25 = vpop.f32.mrb[24].mxu0  ;;  %v743_v37 = vadd.f32 1.0, %v1713_v13  ;;  %1736 = verf.f32 %v627_v20  ;;  %v855_v45 = vpack.c.bf16 %v803_v61, %v2111_v50  ;;  %v857_v11 = vpack.c.bf16 %v805_v2, %v801_v55 }
 0x14d   :  { %v1717_v39 = vpop.eup %1716  ;;  %v2162_v43 = vpop.f32.mrb[24].mxu1  ;;  %v745_v59 = vadd.f32 1.0, %v1715_v5  ;;  %1738 = verf.f32 %v629_v28  ;;  %v2185_v32 = vmul.f32 %v742_v40, %v2069_v17  ;;  %v2188_v21 = vmul.f32 %v744_v0, %v2080_v33 }
 0x14e   :  { %v1719_v31 = vpop.eup %1718  ;;  %v2168_v30 = vpop.f32.mrb[25].mxu0  ;;  %v746_v8 = vadd.f32 1.0, %v1717_v39  ;;  %v2191_v50 = vmul.f32 0.5, %v2083_v35  ;;  %1182 = vmatprep.mubr.bf16.mxu0 %v855_v45  ;;  %v630_v27 = vmul.f32 0.70710677, %v2106_v4  ;;  %v2195_v60 = vmul.f32 %v743_v37, %v2088_v42  ;;  %1279 = vmatprep.mubr.bf16.mxu1 %v857_v11 }
 0x14f   :  { %v2170_v49 = vpop.f32.mrb[25].mxu1  ;;  %v1721_v44 = vpop.eup %1720  ;;  %v748_v10 = vadd.f32 1.0, %v1719_v31  ;;  %v632_v57 = vmul.f32 0.70710677, %v2108_v6  ;;  %v854_v33 = vpack.c.bf16 %v2140_v63, %v2077_v26  ;;  %v856_v35 = vpack.c.bf16 %v804_v47, %v2096_v54 }
 0x150   :  { %v2176_v41 = vpop.f32.mrb[26].mxu0  ;;  %v2178_v52 = vpop.f32.mrb[26].mxu1  ;;  %v747_v55 = vadd.f32 1.0, %v1721_v44  ;;  %1740 = verf.f32 %v630_v27  ;;  %v809_v24 = vmul.f32 %v745_v59, %v2092_v46  ;;  %v2203_v5 = vmul.f32 %v746_v8, %v2099_v58 }
 0x151   :  { %v1723_v29 = vpop.eup %1722  ;;  %v2180_v14 = vpop.f32.mrb[27].mxu0  ;;  %v2206_v42 = vmul.f32 %v748_v10, %v2103_v3  ;;  %v2209_v2 = vmul.f32 0.5, %v2085_v36  ;;  %1742 = verf.f32 %v632_v57  ;;  %1183 = vmatmul.mubr.bf16.gmra.mrb[40].mxu0 %v854_v33  ;;  %1280 = vmatmul.mubr.bf16.gmra.mrb[40].mxu1 %v856_v35  ;;  %v631_v26 = vmul.f32 0.70710677, %v2113_v9 }
 0x152   :  { %v2182_v38 = vpop.f32.mrb[27].mxu1  ;;  %v1725_v19 = vpop.eup %1724  ;;  %v749_v62 = vadd.f32 1.0, %v1723_v29  ;;  %v633_v54 = vmul.f32 0.70710677, %v2115_v48  ;;  %v811_v46 = vmul.f32 %v747_v55, %v2125_v18  ;;  %v2215_v58 = vmul.f32 0.5, %v2106_v4 }
 0x153   :  { %v1727_v13 = vpop.eup %1726  ;;  %v750_v17 = vadd.f32 1.0, %v1725_v19  ;;  %v634_v3 = vmul.f32 0.70710677, %v2120_v16  ;;  %v2227_v37 = vmul.f32 0.5, %v2108_v6  ;;  %1744 = verf.f32 %v631_v26 }
 0x154   :  { %v1729_v61 = vpop.eup %1728  ;;  %v752_v39 = vadd.f32 1.0, %v1727_v13  ;;  %v2218_v40 = vpop.f32.mrb[28].mxu0  ;;  %v813_v20 = vmul.f32 %v749_v62, %v2136_v56  ;;  %v2234_v44 = vmul.f32 0.5, %v2113_v9  ;;  %v2237_v59 = vmul.f32 0.5, %v2115_v48 }
 0x155   :  { %v1731_v63 = vpop.eup %1730  ;;  %v751_v47 = vadd.f32 1.0, %v1729_v61  ;;  %v2220_v36 = vpop.f32.mrb[28].mxu1  ;;  %v2224_v31 = vmul.f32 %v750_v17, %v2143_v1  ;;  %1746 = verf.f32 %v633_v54  ;;  %v636_v56 = vmul.f32 0.70710677, %v2122_v53 }
 0x156   :  { %v1733_v0 = vpop.eup %1732  ;;  %v2229_v18 = vpop.f32.mrb[29].mxu0  ;;  %v2245_v29 = vmul.f32 %v752_v39, %v2149_v15  ;;  %v753_v8 = vadd.f32 1.0, %v1731_v63  ;;  %1748 = verf.f32 %v634_v3  ;;  %v635_v10 = vmul.f32 0.70710677, %v2130_v22 }
 0x157   :  { %v2231_v4 = vpop.f32.mrb[29].mxu1  ;;  %v1735_v28 = vpop.eup %1734  ;;  %v2253_v19 = vmul.f32 %v751_v47, %v2154_v23  ;;  %v754_v27 = vadd.f32 1.0, %v1733_v0  ;;  %v2256_v55 = vmul.f32 0.5, %v2120_v16  ;;  %1750 = verf.f32 %v636_v56 }
 0x158   :  { %v2240_v1 = vpop.f32.mrb[30].mxu0  ;;  %v2242_v45 = vpop.f32.mrb[30].mxu1  ;;  %v2259_v15 = vmul.f32 0.5, %v2122_v53  ;;  %1752 = verf.f32 %v635_v10  ;;  %v637_v62 = vmul.f32 0.70710677, %v2132_v12  ;;  %v859_v57 = vpack.c.bf16 %v811_v46, %v2195_v60 }
 0x159   :  { %v1737_v6 = vpop.eup %1736  ;;  %v2248_v9 = vpop.f32.mrb[31].mxu0  ;;  %v756_v13 = vadd.f32 1.0, %v1735_v28  ;;  %v861_v33 = vpack.c.bf16 %v813_v20, %v809_v24  ;;  %v638_v35 = vmul.f32 0.70710677, %v2160_v25  ;;  %v817_v61 = vmul.f32 %v753_v8, %v2157_v34 }
 0x15a   :  { %v2250_v11 = vpop.f32.mrb[31].mxu1  ;;  %v1739_v48 = vpop.eup %1738  ;;  %v755_v17 = vadd.f32 1.0, %v1737_v6  ;;  %1754 = verf.f32 %v637_v62  ;;  %1190 = vmatprep.mubr.bf16.mxu0 %v859_v57  ;;  %v640_v16 = vmul.f32 0.70710677, %v2162_v43  ;;  %v2267_v53 = vmul.f32 %v754_v27, %v2165_v7 }
 0x15b   :  { %v1741_v23 = vpop.eup %1740  ;;  %v757_v39 = vadd.f32 1.0, %v1739_v48  ;;  %1287 = vmatprep.mubr.bf16.mxu1 %v861_v33  ;;  %1756 = verf.f32 %v638_v35  ;;  %v858_v60 = vpack.c.bf16 %v2203_v5, %v2185_v32  ;;  %v860_v24 = vpack.c.bf16 %v2206_v42, %v2188_v21 }
 0x15c   :  { %v1743_v26 = vpop.eup %1742  ;;  %v758_v54 = vadd.f32 1.0, %v1741_v23  ;;  %v2274_v34 = vmul.f32 0.5, %v2130_v22  ;;  %1758 = verf.f32 %v640_v16  ;;  %v639_v63 = vmul.f32 0.70710677, %v2168_v30 }
 0x15d   :  { %v820_v46 = vmul.f32 %v756_v13, %v2173_v51  ;;  %v819_v7 = vmul.f32 %v755_v17, %v2191_v50  ;;  %v2280_v47 = vmul.f32 0.5, %v2132_v12  ;;  %1191 = vmatmul.mubr.bf16.gmra.mrb[44].mxu0 %v858_v60  ;;  %1288 = vmatmul.mubr.bf16.gmra.mrb[44].mxu1 %v860_v24  ;;  %v641_v32 = vmul.f32 0.70710677, %v2170_v49  ;;  %v1745_v21 = vpop.eup %1744 }
 0x15e   :  { %v821_v5 = vmul.f32 %v757_v39, %v2209_v2  ;;  %v2285_v22 = vmul.f32 0.5, %v2160_v25  ;;  %1760 = verf.f32 %v639_v63  ;;  %v642_v42 = vmul.f32 0.70710677, %v2176_v41 }
 0x15f   :  { %v1747_v3 = vpop.eup %1746  ;;  %v760_v51 = vadd.f32 1.0, %v1743_v26  ;;  %v576_v50 = vmul.f32 0.5, %v2162_v43  ;;  %1762 = verf.f32 %v641_v32  ;;  %v644_v12 = vmul.f32 0.70710677, %v2178_v52 }
 0x160   :  { %v1749_v0 = vpop.eup %1748  ;;  %v2291_v20 = vmul.f32 %v758_v54, %v2215_v58  ;;  %v575_v28 = vmul.f32 0.5, %v2168_v30  ;;  %1764 = verf.f32 %v642_v42  ;;  %v643_v25 = vmul.f32 0.70710677, %v2180_v14 }
 0x161   :  { %v1751_v2 = vpop.eup %1750  ;;  %v577_v56 = vmul.f32 0.5, %v2170_v49  ;;  %v578_v6 = vmul.f32 0.5, %v2176_v41  ;;  %1766 = verf.f32 %v644_v12  ;;  %v645_v43 = vmul.f32 0.70710677, %v2182_v38 }
 0x162   :  { %v1753_v8 = vpop.eup %1752  ;;  %v759_v10 = vadd.f32 1.0, %v1745_v21  ;;  %v761_v48 = vadd.f32 1.0, %v1747_v3  ;;  %1768 = verf.f32 %v643_v25  ;;  %v863_v58 = vpack.c.bf16 %v819_v7, %v2253_v19 }
 0x163   :  { %v2300_v27 = vmul.f32 %v760_v51, %v2227_v37  ;;  %v580_v30 = vmul.f32 0.5, %v2178_v52  ;;  %1770 = verf.f32 %v645_v43  ;;  %v865_v62 = vpack.c.bf16 %v821_v5, %v817_v61 }
 0x164   :  { %v1755_v57 = vpop.eup %1754  ;;  %v762_v49 = vadd.f32 1.0, %v1749_v0  ;;  %v764_v13 = vadd.f32 1.0, %v1751_v2  ;;  %v579_v41 = vmul.f32 0.5, %v2180_v14  ;;  %1198 = vmatprep.mubr.bf16.mxu0 %v863_v58  ;;  %v646_v17 = vmul.f32 0.70710677, %v2218_v40 }
 0x165   :  { %v1757_v33 = vpop.eup %1756  ;;  %v763_v35 = vadd.f32 1.0, %v1753_v8  ;;  %v581_v23 = vmul.f32 0.5, %v2182_v38  ;;  %1295 = vmatprep.mubr.bf16.mxu1 %v865_v62  ;;  %v648_v37 = vmul.f32 0.70710677, %v2220_v36  ;;  %v862_v52 = vpack.c.bf16 %v2267_v53, %v2224_v31 }
 0x166   :  { %v1759_v19 = vpop.eup %1758  ;;  %v823_v61 = vmul.f32 %v759_v10, %v2234_v44  ;;  %v825_v39 = vmul.f32 %v761_v48, %v2237_v59  ;;  %v765_v16 = vadd.f32 1.0, %v1755_v57  ;;  %v864_v14 = vpack.c.bf16 %v820_v46, %v2245_v29 }
 0x167   :  { %v766_v60 = vadd.f32 1.0, %v1757_v33  ;;  %v768_v24 = vadd.f32 1.0, %v1759_v19  ;;  %1772 = verf.f32 %v646_v17  ;;  %1199 = vmatmul.mubr.bf16.gmra.mrb[48].mxu0 %v862_v52  ;;  %v647_v38 = vmul.f32 0.70710677, %v2229_v18 }
 0x168   :  { %v1761_v26 = vpop.eup %1760  ;;  %v826_v54 = vmul.f32 %v762_v49, %v2256_v55  ;;  %v828_v63 = vmul.f32 %v764_v13, %v2259_v15  ;;  %1774 = verf.f32 %v648_v37  ;;  %1296 = vmatmul.mubr.bf16.gmra.mrb[48].mxu1 %v864_v14  ;;  %v649_v31 = vmul.f32 0.70710677, %v2231_v4 }
 0x169   :  { %v1763_v44 = vpop.eup %1762  ;;  %v827_v59 = vmul.f32 %v763_v35, %v2274_v34  ;;  %v767_v53 = vadd.f32 1.0, %v1761_v26  ;;  %1776 = verf.f32 %v647_v38  ;;  %v650_v29 = vmul.f32 0.70710677, %v2240_v1 }
 0x16a   :  { %v1765_v46 = vpop.eup %1764  ;;  %v829_v7 = vmul.f32 %v765_v16, %v2280_v47  ;;  %v769_v32 = vadd.f32 1.0, %v1763_v44  ;;  %1778 = verf.f32 %v649_v31  ;;  %v652_v55 = vmul.f32 0.70710677, %v2242_v45 }
 0x16b   :  { %v1767_v21 = vpop.eup %1766  ;;  %v830_v15 = vmul.f32 %v766_v60, %v2285_v22  ;;  %v832_v5 = vmul.f32 %v768_v24, %v576_v50  ;;  %v770_v42 = vadd.f32 1.0, %v1765_v46  ;;  %1780 = verf.f32 %v650_v29 }
 0x16c   :  { %v1769_v3 = vpop.eup %1768  ;;  %v831_v51 = vmul.f32 %v767_v53, %v575_v28  ;;  %v772_v34 = vadd.f32 1.0, %v1767_v21  ;;  %1782 = verf.f32 %v652_v55  ;;  %v651_v12 = vmul.f32 0.70710677, %v2248_v9 }
 0x16d   :  { %v1771_v0 = vpop.eup %1770  ;;  %v833_v25 = vmul.f32 %v769_v32, %v577_v56  ;;  %v834_v2 = vmul.f32 %v770_v42, %v578_v6  ;;  %v771_v47 = vadd.f32 1.0, %v1769_v3  ;;  %v653_v43 = vmul.f32 0.70710677, %v2250_v11 }
 0x16e   :  { %v836_v8 = vmul.f32 %v772_v34, %v580_v30  ;;  %v773_v10 = vadd.f32 1.0, %v1771_v0  ;;  %1784 = verf.f32 %v651_v12  ;;  %v867_v48 = vpack.c.bf16 %v827_v59, %v823_v61 }
 0x16f   :  { %v835_v22 = vmul.f32 %v771_v47, %v579_v41  ;;  %1786 = verf.f32 %v653_v43  ;;  %v869_v50 = vpack.c.bf16 %v829_v7, %v825_v39  ;;  %v866_v58 = vpack.c.bf16 %v826_v54, %v2291_v20 }
 0x170   :  { %v837_v28 = vmul.f32 %v773_v10, %v581_v23  ;;  %1206 = vmatprep.mubr.bf16.mxu0 %v867_v48  ;;  %v868_v62 = vpack.c.bf16 %v828_v63, %v2300_v27  ;;  %v870_v57 = vpack.c.bf16 %v834_v2, %v830_v15  ;;  %v872_v49 = vpack.c.bf16 %v836_v8, %v832_v5 }
 0x171   :  { %v1773_v56 = vpop.eup %1772  ;;  %1303 = vmatprep.mubr.bf16.mxu1 %v869_v50  ;;  %1207 = vmatmul.mubr.bf16.gmra.mrb[52].mxu0 %v866_v58  ;;  %v871_v6 = vpack.c.bf16 %v835_v22, %v831_v51  ;;  %v582_v37 = vmul.f32 0.5, %v2218_v40  ;;  %v586_v27 = vmul.f32 0.5, %v2240_v1  ;;  %v584_v19 = vmul.f32 0.5, %v2220_v36 }
 0x172   :  { %v1775_v13 = vpop.eup %1774  ;;  %1304 = vmatmul.mubr.bf16.gmra.mrb[52].mxu1 %v868_v62  ;;  %v873_v30 = vpack.c.bf16 %v837_v28, %v833_v25  ;;  %v774_v33 = vadd.f32 1.0, %v1773_v56  ;;  %v588_v39 = vmul.f32 0.5, %v2242_v45  ;;  %v583_v24 = vmul.f32 0.5, %v2229_v18 }
 0x173   :  { %v1777_v17 = vpop.eup %1776  ;;  %1214 = vmatprep.mubr.bf16.mxu0 %v871_v6  ;;  %v776_v20 = vadd.f32 1.0, %v1775_v13  ;;  %v587_v40 = vmul.f32 0.5, %v2248_v9  ;;  %v585_v1 = vmul.f32 0.5, %v2231_v4  ;;  %v589_v36 = vmul.f32 0.5, %v2250_v11 }
 0x174   :  { %v1779_v41 = vpop.eup %1778  ;;  %1311 = vmatprep.mubr.bf16.mxu1 %v873_v30  ;;  %v775_v61 = vadd.f32 1.0, %v1777_v17  ;;  %v838_v60 = vmul.f32 %v774_v33, %v582_v37 }
 0x175   :  { %v1781_v35 = vpop.eup %1780  ;;  %v777_v38 = vadd.f32 1.0, %v1779_v41  ;;  %v840_v63 = vmul.f32 %v776_v20, %v584_v19 }
 0x176   :  { %v1783_v23 = vpop.eup %1782  ;;  %v778_v52 = vadd.f32 1.0, %v1781_v35  ;;  %v839_v53 = vmul.f32 %v775_v61, %v583_v24 }
 0x177   :  { %v780_v16 = vadd.f32 1.0, %v1783_v23  ;;  %v841_v18 = vmul.f32 %v777_v38, %v585_v1 }
 0x178   :  { %v1785_v14 = vpop.eup %1784  ;;  %v842_v26 = vmul.f32 %v778_v52, %v586_v27 }
 0x179   :  { %v1787_v54 = vpop.eup %1786  ;;  %v844_v31 = vmul.f32 %v780_v16, %v588_v39  ;;  %v779_v44 = vadd.f32 1.0, %v1785_v14  ;;  %1215 = vmatmul.mubr.bf16.gmra.mrb[56].mxu0 %v870_v57 }
 0x17a   :  { %v781_v59 = vadd.f32 1.0, %v1787_v54  ;;  %1312 = vmatmul.mubr.bf16.gmra.mrb[56].mxu1 %v872_v49  ;;  %v874_v45 = vpack.c.bf16 %v842_v26, %v838_v60 }
 0x17b   :  { %v843_v29 = vmul.f32 %v779_v44, %v587_v40  ;;  %v876_v46 = vpack.c.bf16 %v844_v31, %v840_v63 }
 0x17c   :  { %v845_v7 = vmul.f32 %v781_v59, %v589_v36 }
 0x17d   :  { %v875_v32 = vpack.c.bf16 %v843_v29, %v839_v53 }
 0x17e   :  { %v877_v55 = vpack.c.bf16 %v845_v7, %v841_v18 }
 0x17f   :  { %1222 = vmatprep.mubr.bf16.mxu0 %v875_v32 }
 0x180   :  { %1319 = vmatprep.mubr.bf16.mxu1 %v877_v55 }
 0x181   :  { %1223 = vmatmul.mubr.bf16.gmra.mrb[60].mxu0 %v874_v45 }
 0x182   :  { %1320 = vmatmul.mubr.bf16.gmra.mrb[60].mxu1 %v876_v46 }
 0x20c   :  { %v1450_v9 = vpop.f32.mrb[32].mxu0 }
 0x20d   :  { %v1514_v21 = vpop.f32.mrb[32].mxu1  ;;  %v1451_v15 = vpop.f32.mrb[33].mxu0 }
 0x20e   :  { %v1515_v4 = vpop.f32.mrb[33].mxu1  ;;  %v1452_v5 = vadd.f32 %v1451_v15, %v1450_v9  ;;  %v1453_v42 = vpop.f32.mrb[34].mxu0 }
 0x20f   :  { %v1516_v11 = vadd.f32 %v1515_v4, %v1514_v21  ;;  %v1517_v3 = vpop.f32.mrb[34].mxu1  ;;  %v1454_v51 = vpop.f32.mrb[35].mxu0 }
 0x210   :  { %v1518_v34 = vpop.f32.mrb[35].mxu1  ;;  %v1455_v0 = vadd.f32 %v1454_v51, %v1453_v42 }
 0x211   :  { %v1266_v12 = vadd.f32 %v1516_v11, %v1452_v5  ;;  %v1519_v25 = vadd.f32 %v1518_v34, %v1517_v3 }
 0x213   :  { %1328 = vst [vmem:[#allocation7] sm:$0xff] %v1266_v12  ;;  %v1269_v2 = vadd.f32 %v1519_v25, %v1455_v0 }
 0x215   :  { %1329 = vst [vmem:[#allocation7 + $0x8] sm:$0xff] %v1269_v2 }
 0x219   :  { %v1456_v47 = vpop.f32.mrb[36].mxu0 }
 0x21a   :  { %v1520_v43 = vpop.f32.mrb[36].mxu1  ;;  %v1457_v8 = vpop.f32.mrb[37].mxu0 }
 0x21b   :  { %v1458_v10 = vadd.f32 %v1457_v8, %v1456_v47  ;;  %v1521_v48 = vpop.f32.mrb[37].mxu1  ;;  %v1459_v22 = vpop.f32.mrb[38].mxu0 }
 0x21c   :  { %v1522_v50 = vadd.f32 %v1521_v48, %v1520_v43  ;;  %v1523_v58 = vpop.f32.mrb[38].mxu1  ;;  %v1460_v28 = vpop.f32.mrb[39].mxu0 }
 0x21d   :  { %v1461_v62 = vadd.f32 %v1460_v28, %v1459_v22  ;;  %v1524_v57 = vpop.f32.mrb[39].mxu1 }
 0x21e   :  { %v1274_v49 = vadd.f32 %v1522_v50, %v1458_v10  ;;  %v1525_v56 = vadd.f32 %v1524_v57, %v1523_v58 }
 0x220   :  { %1330 = vst [vmem:[#allocation7 + $0x10] sm:$0xff] %v1274_v49  ;;  %v1277_v6 = vadd.f32 %v1525_v56, %v1461_v62 }
 0x222   :  { %1331 = vst [vmem:[#allocation7 + $0x18] sm:$0xff] %v1277_v6 }
 0x224   :  { %v1462_v13 = vpop.f32.mrb[40].mxu0  ;;  %v1526_v30 = vpop.f32.mrb[40].mxu1 }
 0x225   :  { %v1463_v17 = vpop.f32.mrb[41].mxu0  ;;  %v1527_v41 = vpop.f32.mrb[41].mxu1 }
 0x226   :  { %v1464_v33 = vadd.f32 %v1463_v17, %v1462_v13  ;;  %v1528_v35 = vadd.f32 %v1527_v41, %v1526_v30  ;;  %v1465_v20 = vpop.f32.mrb[42].mxu0  ;;  %v1529_v23 = vpop.f32.mrb[42].mxu1 }
 0x227   :  { %v1466_v37 = vpop.f32.mrb[43].mxu0  ;;  %v1530_v27 = vpop.f32.mrb[43].mxu1 }
 0x228   :  { %v1282_v52 = vadd.f32 %v1528_v35, %v1464_v33  ;;  %v1467_v19 = vadd.f32 %v1466_v37, %v1465_v20  ;;  %v1531_v61 = vadd.f32 %v1530_v27, %v1529_v23 }
 0x22a   :  { %1332 = vst [vmem:[#allocation7 + $0x20] sm:$0xff] %v1282_v52  ;;  %v1285_v39 = vadd.f32 %v1531_v61, %v1467_v19 }
 0x22c   :  { %1333 = vst [vmem:[#allocation7 + $0x28] sm:$0xff] %v1285_v39 }
 0x230   :  { %v1468_v16 = vpop.f32.mrb[44].mxu0  ;;  %v1532_v14 = vpop.f32.mrb[44].mxu1 }
 0x231   :  { %v1469_v60 = vpop.f32.mrb[45].mxu0  ;;  %v1533_v24 = vpop.f32.mrb[45].mxu1 }
 0x232   :  { %v1470_v38 = vadd.f32 %v1469_v60, %v1468_v16  ;;  %v1534_v26 = vadd.f32 %v1533_v24, %v1532_v14  ;;  %v1471_v54 = vpop.f32.mrb[46].mxu0  ;;  %v1535_v63 = vpop.f32.mrb[46].mxu1 }
 0x233   :  { %v1472_v31 = vpop.f32.mrb[47].mxu0  ;;  %v1536_v40 = vpop.f32.mrb[47].mxu1 }
 0x234   :  { %v1290_v44 = vadd.f32 %v1534_v26, %v1470_v38  ;;  %v1473_v1 = vadd.f32 %v1472_v31, %v1471_v54  ;;  %v1537_v36 = vadd.f32 %v1536_v40, %v1535_v63 }
 0x236   :  { %1334 = vst [vmem:[#allocation7 + $0x30] sm:$0xff] %v1290_v44  ;;  %v1293_v59 = vadd.f32 %v1537_v36, %v1473_v1 }
 0x238   :  { %1335 = vst [vmem:[#allocation7 + $0x38] sm:$0xff] %v1293_v59 }
 0x23a   :  { %v1474_v45 = vpop.f32.mrb[48].mxu0 }
 0x23b   :  { %v1538_v53 = vpop.f32.mrb[48].mxu1  ;;  %v1475_v29 = vpop.f32.mrb[49].mxu0 }
 0x23c   :  { %v1476_v46 = vadd.f32 %v1475_v29, %v1474_v45  ;;  %v1539_v18 = vpop.f32.mrb[49].mxu1  ;;  %v1477_v7 = vpop.f32.mrb[50].mxu0 }
 0x23d   :  { %v1540_v32 = vadd.f32 %v1539_v18, %v1538_v53  ;;  %v1541_v55 = vpop.f32.mrb[50].mxu1  ;;  %v1478_v9 = vpop.f32.mrb[51].mxu0 }
 0x23e   :  { %v1479_v21 = vadd.f32 %v1478_v9, %v1477_v7  ;;  %v1542_v15 = vpop.f32.mrb[51].mxu1 }
 0x23f   :  { %v1298_v4 = vadd.f32 %v1540_v32, %v1476_v46  ;;  %v1543_v5 = vadd.f32 %v1542_v15, %v1541_v55 }
 0x241   :  { %1336 = vst [vmem:[#allocation7 + $0x40] sm:$0xff] %v1298_v4  ;;  %v1301_v11 = vadd.f32 %v1543_v5, %v1479_v21 }
 0x243   :  { %1337 = vst [vmem:[#allocation7 + $0x48] sm:$0xff] %v1301_v11 }
 0x244   :  { %v1480_v42 = vpop.f32.mrb[52].mxu0 }
 0x245   :  { %v1544_v3 = vpop.f32.mrb[52].mxu1  ;;  %v1481_v51 = vpop.f32.mrb[53].mxu0 }
 0x246   :  { %v1482_v34 = vadd.f32 %v1481_v51, %v1480_v42  ;;  %v1545_v12 = vpop.f32.mrb[53].mxu1  ;;  %v1483_v0 = vpop.f32.mrb[54].mxu0 }
 0x247   :  { %v1546_v25 = vadd.f32 %v1545_v12, %v1544_v3  ;;  %v1547_v2 = vpop.f32.mrb[54].mxu1  ;;  %v1484_v47 = vpop.f32.mrb[55].mxu0 }
 0x248   :  { %v1485_v43 = vadd.f32 %v1484_v47, %v1483_v0  ;;  %v1548_v8 = vpop.f32.mrb[55].mxu1 }
 0x249   :  { %v1306_v10 = vadd.f32 %v1546_v25, %v1482_v34  ;;  %v1549_v48 = vadd.f32 %v1548_v8, %v1547_v2 }
 0x24b   :  { %1338 = vst [vmem:[#allocation7 + $0x50] sm:$0xff] %v1306_v10  ;;  %v1309_v22 = vadd.f32 %v1549_v48, %v1485_v43 }
 0x24c   :  { %v1486_v50 = vpop.f32.mrb[56].mxu0 }
 0x24d   :  { %1339 = vst [vmem:[#allocation7 + $0x58] sm:$0xff] %v1309_v22  ;;  %v1550_v58 = vpop.f32.mrb[56].mxu1  ;;  %v1487_v28 = vpop.f32.mrb[57].mxu0 }
 0x24e   :  { %v1488_v62 = vadd.f32 %v1487_v28, %v1486_v50  ;;  %v1551_v57 = vpop.f32.mrb[57].mxu1  ;;  %v1489_v49 = vpop.f32.mrb[58].mxu0 }
 0x24f   :  { %v1552_v56 = vadd.f32 %v1551_v57, %v1550_v58  ;;  %v1553_v6 = vpop.f32.mrb[58].mxu1  ;;  %v1490_v13 = vpop.f32.mrb[59].mxu0 }
 0x250   :  { %v1491_v30 = vadd.f32 %v1490_v13, %v1489_v49  ;;  %v1554_v17 = vpop.f32.mrb[59].mxu1 }
 0x251   :  { %v1314_v41 = vadd.f32 %v1552_v56, %v1488_v62  ;;  %v1555_v33 = vadd.f32 %v1554_v17, %v1553_v6 }
 0x253   :  { %1340 = vst [vmem:[#allocation7 + $0x60] sm:$0xff] %v1314_v41  ;;  %v1317_v35 = vadd.f32 %v1555_v33, %v1491_v30 }
 0x254   :  { %v1492_v20 = vpop.f32.mrb[60].mxu0 }
 0x255   :  { %1341 = vst [vmem:[#allocation7 + $0x68] sm:$0xff] %v1317_v35  ;;  %v1556_v23 = vpop.f32.mrb[60].mxu1  ;;  %v1493_v37 = vpop.f32.mrb[61].mxu0 }
 0x256   :  { %v1494_v27 = vadd.f32 %v1493_v37, %v1492_v20  ;;  %v1557_v52 = vpop.f32.mrb[61].mxu1  ;;  %v1495_v19 = vpop.f32.mrb[62].mxu0 }
 0x257   :  { %v1558_v61 = vadd.f32 %v1557_v52, %v1556_v23  ;;  %v1559_v39 = vpop.f32.mrb[62].mxu1  ;;  %v1496_v16 = vpop.f32.mrb[63].mxu0 }
 0x258   :  { %v1497_v14 = vadd.f32 %v1496_v16, %v1495_v19  ;;  %v1560_v60 = vpop.f32.mrb[63].mxu1 }
 0x259   :  { %v1322_v24 = vadd.f32 %v1558_v61, %v1494_v27  ;;  %v1561_v38 = vadd.f32 %v1560_v60, %v1559_v39 }
 0x25b   :  { %1342 = vst [vmem:[#allocation7 + $0x70] sm:$0xff] %v1322_v24  ;;  %v1325_v26 = vadd.f32 %v1561_v38, %v1497_v14 }
 0x25d   :  { %1343 = vst [vmem:[#allocation7 + $0x78] sm:$0xff] %v1325_v26 }
 0x25e   :  { %1843 = shalt.err (!%p1840_p6)
}
 0x25f   :  { %s1844_s4 = scalar_lea.hbm %s2348_s3, 2048 }
 0x260   :  { %p1845_p7 = scmp.ne.s32.totalorder %s2348_s3, %s1844_s4  ;;  %p1848_p8 = scmp.lt.u32.totalorder %s1844_s4, %s2348_s3 }
 0x262   :  { %p1850_p9 = pnand %p1848_p8, %p1845_p7 }
 0x264   :  { %1853 = shalt.err (!%p1850_p9)
}
 0x265   :  { %s1868_s1 = smov 128   ;;  %s1869_s9 = smov 8  }
 0x266   :  { %1355 = dma.vmem_to_hbm [thread:$0]  %s1350_s27, 2048, %s2348_s3, [#allocation4], %s1868_s1, %s1868_s1, %s1869_s9  }
 0x267   :  { %1858 = dma.done.wait [#allocation4], 2048  }
 0x268   :  { %1859 = vsyncadd [#allocation4], 4294965248 }
 0x269   :  { %1359 = vsyncpa [#allocation3], 1 }
 0x26a   :  { %1360 = vsyncpa [#allocation6], 1 }
 0x26b   :  { %1361 = vsyncpa [#allocation4], 1 }

// kernel: _mlp_forward_jit.1
= control target key start
LH: loop header
LB: loop body
LE: loop exit
PB: predicated region body
PF: predicated region fallthrough
CT: control target
= control target key end

     0   :  { %8 = vsyncpa [#allocation3], 0  ;;  %s2345_s0 = inlined_call_operand.vmem [shape: bf16[128,128], index: 0, kind: input, shape index: {}]   ;;  %s2346_s1 = inlined_call_operand.hbm [shape: bf16[128,512], index: 1, kind: input, shape index: {}]   ;;  %s2347_s2 = inlined_call_operand.hbm [shape: bf16[512,128], index: 2, kind: input, shape index: {}]   ;;  %s2348_s3 = inlined_call_operand.hbm [shape: f32[128,128], index: 3, kind: output, shape index: {}]  }
   0x1   :  { %9 = vsyncpa [#allocation6], 0 }
   0x2   :  { %10 = vsyncpa [#allocation4], 0  ;;  %s1860_s12 = smov [#allocation2]   ;;  %s1788_s16 = scalar_lea.hbm %s2346_s1, 4096 }
   0x3   :  { %s18_s13 = sshll.u32 %s1860_s12, 4  ;;  %p1789_p0 = scmp.ne.s32.totalorder %s2346_s1, %s1788_s16  ;;  %s19_s13 = int_to_ptr.vmem [resolvable:$true] %s18_s13 }
   0x4   :  { %p1792_p1 = scmp.lt.u32.totalorder %s1788_s16, %s2346_s1 }
   0x6   :  { %p1794_p2 = pnand %p1792_p1, %p1789_p0 }
   0x8   :  { %1797 = shalt.err (!%p1794_p2)
}
   0x9   :  { %s1798_s21 = scalar_lea.vmem %s19_s13, 4096  ;;  %p1803_p4 = scmp.lt.s32.totalorder %s19_s13, %s19_s13 }
   0xa   :  { %p1799_p3 = scmp.ne.s32.totalorder %s19_s13, %s1798_s21  ;;  %p1804_p5 = scmp.lt.s32.totalorder %s1798_s21, %s1798_s21 }
   0xc   :  { %p1805_p6 = por %p1804_p5, %p1803_p4 }
   0xe   :  { %p1806_p7 = pnand %p1805_p6, %p1799_p3 }
  0x10   :  { %1809 = shalt.err (!%p1806_p7)
}
  0x11   :  { %s1861_s22 = smov 256   ;;  %s1862_s23 = smov 16  }
  0x12   :  { %24 = dma.hbm_to_vmem [thread:$0]  %s2346_s1, 4096, %s19_s13, [#allocation3], %s1861_s22, %s1861_s22, %s1862_s23  }
  0x13   :  { %s1863_s26 = smov [#allocation5]   ;;  %s1810_s30 = scalar_lea.hbm %s2347_s2, 4096 }
  0x14   :  { %s30_s27 = sshll.u32 %s1863_s26, 4  ;;  %p1811_p8 = scmp.ne.s32.totalorder %s2347_s2, %s1810_s30  ;;  %s31_s27 = int_to_ptr.vmem [resolvable:$true] %s30_s27 }
  0x15   :  { %p1814_p9 = scmp.lt.u32.totalorder %s1810_s30, %s2347_s2 }
  0x17   :  { %p1816_p10 = pnand %p1814_p9, %p1811_p8 }
  0x19   :  { %1819 = shalt.err (!%p1816_p10)
}
  0x1a   :  { %s1820_s8 = scalar_lea.vmem %s31_s27, 4096  ;;  %p1825_p12 = scmp.lt.s32.totalorder %s31_s27, %s31_s27 }
  0x1b   :  { %p1821_p11 = scmp.ne.s32.totalorder %s31_s27, %s1820_s8  ;;  %p1826_p13 = scmp.lt.s32.totalorder %s1820_s8, %s1820_s8 }
  0x1d   :  { %p1827_p0 = por %p1826_p13, %p1825_p12 }
  0x1f   :  { %p1828_p1 = pnand %p1827_p0, %p1821_p11 }
  0x21   :  { %1831 = shalt.err (!%p1828_p1)
}
  0x22   :  { %s1864_s1 = smov 64   ;;  %s1865_s9 = smov 4  }
  0x23   :  { %36 = dma.hbm_to_vmem [thread:$0]  %s2347_s2, 4096, %s31_s27, [#allocation6], %s1864_s1, %s1864_s1, %s1865_s9  }
  0x24   :  { %1854 = dma.done.wait [#allocation3], 4096  }
  0x25   :  { %1855 = vsyncadd [#allocation3], 4294963200 }
  0x26   :  { %1856 = dma.done.wait [#allocation6], 4096  }
  0x27   :  { %1857 = vsyncadd [#allocation6], 4294963200  ;;  %v1866_v0 = vmov 0   ;;  %v1572_v1 = vld [vmem:[#allocation2 + $0x4] ss:$16 sps:$4 sm:$0xff]   ;;  %v1632_v38 = vld [vmem:[#allocation5 + $0x48] sm:$0xff]  }
  0x28   :  { %332 = vmatprep.mubr.bf16.mxu0 %v1866_v0  ;;  %445 = vmatprep.mubr.bf16.mxu1 %v1866_v0  ;;  %v1574_v2 = vld [vmem:[#allocation2 + $0xc] ss:$16 sps:$4 sm:$0xff]   ;;  %v1576_v3 = vld [vmem:[#allocation2] ss:$16 sps:$4 sm:$0xff]   ;;  %v1577_v4 = vld [vmem:[#allocation2 + $0x8] ss:$16 sps:$4 sm:$0xff]  }
  0x29   :  { %300 = vmatprep.subr.bf16.mxu0 %v1572_v1  ;;  %413 = vmatprep.subr.bf16.mxu1 %v1574_v2  ;;  %v1578_v5 = vld [vmem:[#allocation2 + $0x24] ss:$16 sps:$4 sm:$0xff]   ;;  %v1580_v6 = vld [vmem:[#allocation2 + $0x2c] ss:$16 sps:$4 sm:$0xff]   ;;  %v1582_v7 = vld [vmem:[#allocation2 + $0x20] ss:$16 sps:$4 sm:$0xff]  }
  0x2a   :  { %301 = vmatpush1.bf16.msra.mxu0 %v1576_v3  ;;  %414 = vmatpush1.bf16.msra.mxu1 %v1577_v4  ;;  %v1583_v8 = vld [vmem:[#allocation2 + $0x28] ss:$16 sps:$4 sm:$0xff]   ;;  %v1584_v9 = vld [vmem:[#allocation2 + $0x44] ss:$16 sps:$4 sm:$0xff]   ;;  %v1586_v10 = vld [vmem:[#allocation2 + $0x4c] ss:$16 sps:$4 sm:$0xff]  }
  0x2b   :  { %302 = vmatprep.subr.bf16.mxu0 %v1578_v5  ;;  %415 = vmatprep.subr.bf16.mxu1 %v1580_v6  ;;  %v1588_v11 = vld [vmem:[#allocation2 + $0x40] ss:$16 sps:$4 sm:$0xff]   ;;  %v1589_v12 = vld [vmem:[#allocation2 + $0x48] ss:$16 sps:$4 sm:$0xff]   ;;  %v1590_v13 = vld [vmem:[#allocation2 + $0x64] ss:$16 sps:$4 sm:$0xff]  }
  0x2c   :  { %v1592_v14 = vld [vmem:[#allocation2 + $0x6c] ss:$16 sps:$4 sm:$0xff]   ;;  %v1594_v15 = vld [vmem:[#allocation2 + $0x60] ss:$16 sps:$4 sm:$0xff]   ;;  %v1595_v16 = vld [vmem:[#allocation2 + $0x68] ss:$16 sps:$4 sm:$0xff]  }
  0x2d   :  { %v1596_v17 = vld [vmem:[#allocation2 + $0x84] ss:$16 sps:$4 sm:$0xff]   ;;  %v1598_v18 = vld [vmem:[#allocation2 + $0x8c] ss:$16 sps:$4 sm:$0xff]   ;;  %v1600_v19 = vld [vmem:[#allocation2 + $0x80] ss:$16 sps:$4 sm:$0xff]  }
  0x2e   :  { %303 = vmatpush1.bf16.msra.mxu0 %v1582_v7  ;;  %416 = vmatpush1.bf16.msra.mxu1 %v1583_v8  ;;  %v1601_v20 = vld [vmem:[#allocation2 + $0x88] ss:$16 sps:$4 sm:$0xff]   ;;  %v1602_v21 = vld [vmem:[#allocation2 + $0xa4] ss:$16 sps:$4 sm:$0xff]   ;;  %v1604_v22 = vld [vmem:[#allocation2 + $0xac] ss:$16 sps:$4 sm:$0xff]  }
  0x2f   :  { %304 = vmatprep.subr.bf16.mxu0 %v1584_v9  ;;  %417 = vmatprep.subr.bf16.mxu1 %v1586_v10  ;;  %v1606_v23 = vld [vmem:[#allocation2 + $0xa0] ss:$16 sps:$4 sm:$0xff]   ;;  %v1607_v24 = vld [vmem:[#allocation2 + $0xa8] ss:$16 sps:$4 sm:$0xff]   ;;  %v1608_v25 = vld [vmem:[#allocation2 + $0xc4] ss:$16 sps:$4 sm:$0xff]  }
  0x30   :  { %v1610_v26 = vld [vmem:[#allocation2 + $0xcc] ss:$16 sps:$4 sm:$0xff]   ;;  %v1612_v27 = vld [vmem:[#allocation2 + $0xc0] ss:$16 sps:$4 sm:$0xff]   ;;  %v1613_v28 = vld [vmem:[#allocation2 + $0xc8] ss:$16 sps:$4 sm:$0xff]  }
  0x31   :  { %v1614_v29 = vld [vmem:[#allocation2 + $0xe4] ss:$16 sps:$4 sm:$0xff]   ;;  %v1616_v30 = vld [vmem:[#allocation2 + $0xec] ss:$16 sps:$4 sm:$0xff]   ;;  %v1618_v31 = vld [vmem:[#allocation2 + $0xe0] ss:$16 sps:$4 sm:$0xff]  }
  0x32   :  { %305 = vmatpush1.bf16.msra.mxu0 %v1588_v11  ;;  %418 = vmatpush1.bf16.msra.mxu1 %v1589_v12  ;;  %v1619_v32 = vld [vmem:[#allocation2 + $0xe8] ss:$16 sps:$4 sm:$0xff]   ;;  %v1620_v33 = vld [vmem:[%s2345_s0] sm:$0xff]   ;;  %v1636_v43 = vld [vmem:[#allocation5 + $0x50] sm:$0xff]  }
  0x33   :  { %306 = vmatprep.subr.bf16.mxu0 %v1590_v13  ;;  %419 = vmatprep.subr.bf16.mxu1 %v1592_v14  ;;  %v1628_v34 = vld [vmem:[#allocation5 + $0x40] sm:$0xff]   ;;  %v1633_v39 = vld [vmem:[#allocation5 + $0xc8] sm:$0xff]   ;;  %v1637_v44 = vld [vmem:[#allocation5 + $0xd0] sm:$0xff]  }
  0x34   :  { %v1629_v35 = vld [vmem:[#allocation5 + $0xc0] sm:$0xff]   ;;  %v1634_v40 = vld [vmem:[#allocation5 + $0x8] sm:$0xff]   ;;  %v1638_v45 = vld [vmem:[#allocation5 + $0x10] sm:$0xff]  }
  0x35   :  { %v1630_v36 = vld [vmem:[#allocation5] sm:$0xff]   ;;  %v1621_v41 = vld [vmem:[%s2345_s0 + $0x8] sm:$0xff]   ;;  %v1639_v46 = vld [vmem:[#allocation5 + $0x90] sm:$0xff]  }
  0x36   :  { %307 = vmatpush1.bf16.msra.mxu0 %v1594_v15  ;;  %420 = vmatpush1.bf16.msra.mxu1 %v1595_v16  ;;  %v1631_v37 = vld [vmem:[#allocation5 + $0x80] sm:$0xff]   ;;  %v1635_v42 = vld [vmem:[#allocation5 + $0x88] sm:$0xff]   ;;  %v1640_v47 = vld [vmem:[#allocation5 + $0x58] sm:$0xff]  }
  0x37   :  { %308 = vmatprep.subr.bf16.mxu0 %v1596_v17  ;;  %421 = vmatprep.subr.bf16.mxu1 %v1598_v18  ;;  %v1641_v48 = vld [vmem:[#allocation5 + $0xd8] sm:$0xff]   ;;  %v1622_v50 = vld [vmem:[%s2345_s0 + $0x10] sm:$0xff]   ;;  %v1644_v52 = vld [vmem:[#allocation5 + $0x60] sm:$0xff]  }
  0x38   :  { %v1642_v49 = vld [vmem:[#allocation5 + $0x18] sm:$0xff]   ;;  %v1645_v53 = vld [vmem:[#allocation5 + $0xe0] sm:$0xff]   ;;  %v1648_v56 = vld [vmem:[#allocation5 + $0x68] sm:$0xff]  }
  0x39   :  { %v1643_v51 = vld [vmem:[#allocation5 + $0x98] sm:$0xff]   ;;  %v1646_v54 = vld [vmem:[#allocation5 + $0x20] sm:$0xff]   ;;  %v1649_v57 = vld [vmem:[#allocation5 + $0xe8] sm:$0xff]  }
  0x3a   :  { %309 = vmatpush1.bf16.msra.mxu0 %v1600_v19  ;;  %422 = vmatpush1.bf16.msra.mxu1 %v1601_v20  ;;  %v1647_v55 = vld [vmem:[#allocation5 + $0xa0] sm:$0xff]   ;;  %v1623_v58 = vld [vmem:[%s2345_s0 + $0x18] sm:$0xff]   ;;  %v1625_v60 = vld [vmem:[%s2345_s0 + $0x28] sm:$0xff]  }
  0x3b   :  { %310 = vmatprep.subr.bf16.mxu0 %v1602_v21  ;;  %423 = vmatprep.subr.bf16.mxu1 %v1604_v22  ;;  %v1624_v59 = vld [vmem:[%s2345_s0 + $0x20] sm:$0xff]   ;;  %v1626_v61 = vld [vmem:[%s2345_s0 + $0x30] sm:$0xff]   ;;  %v1627_v62 = vld [vmem:[%s2345_s0 + $0x38] sm:$0xff]   ;;  %s1867_s0 = smov [#allocation7]  }
  0x3c   :  { %v1650_v63 = vld [vmem:[#allocation5 + $0x28] sm:$0xff]   ;;  %v1652_v2 = vld [vmem:[#allocation5 + $0x70] sm:$0xff]   ;;  %v1656_v6 = vld [vmem:[#allocation5 + $0x78] sm:$0xff]   ;;  %s1349_s27 = sshll.u32 %s1867_s0, 4  ;;  %s1350_s27 = int_to_ptr.vmem [resolvable:$true] %s1349_s27 }
  0x3d   :  { %v1651_v1 = vld [vmem:[#allocation5 + $0xa8] sm:$0xff]   ;;  %v1653_v3 = vld [vmem:[#allocation5 + $0xf0] sm:$0xff]   ;;  %v1658_v7 = vld [vmem:[#allocation5 + $0x38] sm:$0xff]   ;;  %s1832_s28 = scalar_lea.vmem %s1350_s27, 2048  ;;  %p1837_p3 = scmp.lt.s32.totalorder %s1350_s27, %s1350_s27 }
  0x3e   :  { %311 = vmatpush1.bf16.msra.mxu0 %v1606_v23  ;;  %424 = vmatpush1.bf16.msra.mxu1 %v1607_v24  ;;  %v1654_v4 = vld [vmem:[#allocation5 + $0x30] sm:$0xff]   ;;  %v1659_v8 = vld [vmem:[#allocation5 + $0xb8] sm:$0xff]   ;;  %p1833_p2 = scmp.ne.s32.totalorder %s1350_s27, %s1832_s28  ;;  %p1838_p4 = scmp.lt.s32.totalorder %s1832_s28, %s1832_s28 }
  0x3f   :  { %312 = vmatprep.subr.bf16.mxu0 %v1608_v25  ;;  %425 = vmatprep.subr.bf16.mxu1 %v1610_v26  ;;  %v1655_v5 = vld [vmem:[#allocation5 + $0xb0] sm:$0xff]  }
  0x40   :  { %p1839_p5 = por %p1838_p4, %p1837_p3 }
  0x42   :  { %313 = vmatpush1.bf16.msra.mxu0 %v1612_v27  ;;  %426 = vmatpush1.bf16.msra.mxu1 %v1613_v28  ;;  %p1840_p6 = pnand %p1839_p5, %p1833_p2 }
  0x43   :  { %314 = vmatprep.subr.bf16.mxu0 %v1614_v29  ;;  %427 = vmatprep.subr.bf16.mxu1 %v1616_v30 }
  0x46   :  { %315 = vmatpush1.bf16.msra.mxu0 %v1618_v31  ;;  %428 = vmatpush1.bf16.msra.mxu1 %v1619_v32 }
  0x47   :  { %1434 = vmatprep.subr.bf16.mxu0 %v1628_v34  ;;  %1498 = vmatprep.subr.bf16.mxu1 %v1629_v35 }
  0x49   :  { %333 = vmatmul.mubr.bf16.vlgmr.msra.gmra.mrb[0].mxu0 %v1620_v33  ;;  %446 = vmatmul.mubr.bf16.vlgmr.msra.gmra.mrb[0].mxu1 %v1620_v33 }
  0x4a   :  { %342 = vmatprep.mubr.bf16.mxu0 %v1866_v0  ;;  %455 = vmatprep.mubr.bf16.mxu1 %v1866_v0 }
  0x4b   :  { %1435 = vmatpush3.bf16.msra.mxu0 %v1630_v36  ;;  %1499 = vmatpush3.bf16.msra.mxu1 %v1631_v37 }
  0x4c   :  { %1436 = vmatprep.subr.bf16.mxu0 %v1632_v38  ;;  %1500 = vmatprep.subr.bf16.mxu1 %v1633_v39 }
  0x4f   :  { %1437 = vmatpush3.bf16.msra.mxu0 %v1634_v40  ;;  %1501 = vmatpush3.bf16.msra.mxu1 %v1635_v42 }
  0x50   :  { %1438 = vmatprep.subr.bf16.mxu0 %v1636_v43  ;;  %1502 = vmatprep.subr.bf16.mxu1 %v1637_v44 }
  0x51   :  { %343 = vmatmul.mubr.bf16.gmra.mrb[4].mxu0 %v1621_v41  ;;  %456 = vmatmul.mubr.bf16.gmra.mrb[4].mxu1 %v1621_v41 }
  0x52   :  { %352 = vmatprep.mubr.bf16.mxu0 %v1866_v0  ;;  %465 = vmatprep.mubr.bf16.mxu1 %v1866_v0 }
  0x53   :  { %1439 = vmatpush3.bf16.msra.mxu0 %v1638_v45  ;;  %1503 = vmatpush3.bf16.msra.mxu1 %v1639_v46 }
  0x54   :  { %1440 = vmatprep.subr.bf16.mxu0 %v1640_v47  ;;  %1504 = vmatprep.subr.bf16.mxu1 %v1641_v48 }
  0x57   :  { %1441 = vmatpush3.bf16.msra.mxu0 %v1642_v49  ;;  %1505 = vmatpush3.bf16.msra.mxu1 %v1643_v51 }
  0x58   :  { %1442 = vmatprep.subr.bf16.mxu0 %v1644_v52  ;;  %1506 = vmatprep.subr.bf16.mxu1 %v1645_v53 }
  0x59   :  { %353 = vmatmul.mubr.bf16.gmra.mrb[8].mxu0 %v1622_v50  ;;  %466 = vmatmul.mubr.bf16.gmra.mrb[8].mxu1 %v1622_v50 }
  0x5a   :  { %362 = vmatprep.mubr.bf16.mxu0 %v1866_v0  ;;  %475 = vmatprep.mubr.bf16.mxu1 %v1866_v0 }
  0x5b   :  { %1443 = vmatpush3.bf16.msra.mxu0 %v1646_v54  ;;  %1507 = vmatpush3.bf16.msra.mxu1 %v1647_v55 }
  0x5c   :  { %1444 = vmatprep.subr.bf16.mxu0 %v1648_v56  ;;  %1508 = vmatprep.subr.bf16.mxu1 %v1649_v57 }
  0x5f   :  { %1445 = vmatpush3.bf16.msra.mxu0 %v1650_v63  ;;  %1509 = vmatpush3.bf16.msra.mxu1 %v1651_v1 }
  0x60   :  { %1446 = vmatprep.subr.bf16.mxu0 %v1652_v2  ;;  %1510 = vmatprep.subr.bf16.mxu1 %v1653_v3 }
  0x61   :  { %363 = vmatmul.mubr.bf16.gmra.mrb[12].mxu0 %v1623_v58  ;;  %476 = vmatmul.mubr.bf16.gmra.mrb[12].mxu1 %v1623_v58 }
  0x62   :  { %372 = vmatprep.mubr.bf16.mxu0 %v1866_v0  ;;  %485 = vmatprep.mubr.bf16.mxu1 %v1866_v0 }
  0x63   :  { %1447 = vmatpush3.bf16.msra.mxu0 %v1654_v4  ;;  %1511 = vmatpush3.bf16.msra.mxu1 %v1655_v5 }
  0x64   :  { %1448 = vmatprep.subr.bf16.mxu0 %v1656_v6 }
  0x67   :  { %1449 = vmatpush3.bf16.msra.mxu0 %v1658_v7 }
  0x69   :  { %373 = vmatmul.mubr.bf16.gmra.mrb[16].mxu0 %v1624_v59  ;;  %486 = vmatmul.mubr.bf16.gmra.mrb[16].mxu1 %v1624_v59 }
  0x6a   :  { %382 = vmatprep.mubr.bf16.mxu0 %v1866_v0  ;;  %495 = vmatprep.mubr.bf16.mxu1 %v1866_v0 }
  0x71   :  { %383 = vmatmul.mubr.bf16.gmra.mrb[20].mxu0 %v1625_v60  ;;  %496 = vmatmul.mubr.bf16.gmra.mrb[20].mxu1 %v1625_v60 }
  0x72   :  { %392 = vmatprep.mubr.bf16.mxu0 %v1866_v0  ;;  %505 = vmatprep.mubr.bf16.mxu1 %v1866_v0 }
  0x79   :  { %393 = vmatmul.mubr.bf16.gmra.mrb[24].mxu0 %v1626_v61  ;;  %506 = vmatmul.mubr.bf16.gmra.mrb[24].mxu1 %v1626_v61 }
  0x7a   :  { %402 = vmatprep.mubr.bf16.mxu0 %v1866_v0  ;;  %515 = vmatprep.mubr.bf16.mxu1 %v1866_v0  ;;  %v1657_v0 = vld [vmem:[#allocation5 + $0xf8] sm:$0xff]  }
  0x7b   :  { %1512 = vmatprep.subr.bf16.mxu1 %v1657_v0 }
  0x7c   :  { %1513 = vmatpush3.bf16.msra.mxu1 %v1659_v8 }
  0x81   :  { %403 = vmatmul.mubr.bf16.gmra.mrb[28].mxu0 %v1627_v62  ;;  %516 = vmatmul.mubr.bf16.gmra.mrb[28].mxu1 %v1627_v62 }
 0x11c   :  { %v334_v9 = vpop.f32.mrb[0].mxu0  ;;  %v447_v10 = vpop.f32.mrb[0].mxu1 }
 0x11d   :  { %v590_v11 = vmul.f32 0.70710677, %v334_v9  ;;  %v592_v12 = vmul.f32 0.70710677, %v447_v10  ;;  %v336_v13 = vpop.f32.mrb[1].mxu0  ;;  %v449_v14 = vpop.f32.mrb[1].mxu1 }
 0x11e   :  { %v591_v15 = vmul.f32 0.70710677, %v336_v13  ;;  %v338_v16 = vpop.f32.mrb[2].mxu0  ;;  %v451_v17 = vpop.f32.mrb[2].mxu1  ;;  %v593_v18 = vmul.f32 0.70710677, %v449_v14 }
 0x11f   :  { %1660 = verf.f32 %v590_v11  ;;  %v594_v19 = vmul.f32 0.70710677, %v338_v16  ;;  %v340_v20 = vpop.f32.mrb[3].mxu0  ;;  %v596_v21 = vmul.f32 0.70710677, %v451_v17  ;;  %v453_v22 = vpop.f32.mrb[3].mxu1 }
 0x120   :  { %1662 = verf.f32 %v592_v12  ;;  %v595_v23 = vmul.f32 0.70710677, %v340_v20  ;;  %v597_v24 = vmul.f32 0.70710677, %v453_v22  ;;  %v526_v33 = vmul.f32 0.5, %v334_v9 }
 0x121   :  { %1664 = verf.f32 %v591_v15  ;;  %v528_v34 = vmul.f32 0.5, %v447_v10  ;;  %v1954_v38 = vmul.f32 0.5, %v336_v13  ;;  %v529_v43 = vmul.f32 0.5, %v449_v14 }
 0x122   :  { %1666 = verf.f32 %v593_v18  ;;  %v530_v44 = vmul.f32 0.5, %v338_v16  ;;  %v532_v47 = vmul.f32 0.5, %v451_v17  ;;  %v1956_v48 = vmul.f32 0.5, %v340_v20 }
 0x123   :  { %1668 = verf.f32 %v594_v19  ;;  %v1958_v51 = vmul.f32 0.5, %v453_v22 }
 0x124   :  { %1670 = verf.f32 %v596_v21  ;;  %v344_v25 = vpop.f32.mrb[4].mxu0  ;;  %v457_v26 = vpop.f32.mrb[4].mxu1 }
 0x125   :  { %1672 = verf.f32 %v595_v23  ;;  %v598_v27 = vmul.f32 0.70710677, %v344_v25  ;;  %v346_v28 = vpop.f32.mrb[5].mxu0  ;;  %v459_v29 = vpop.f32.mrb[5].mxu1  ;;  %v600_v30 = vmul.f32 0.70710677, %v457_v26 }
 0x126   :  { %1674 = verf.f32 %v597_v24  ;;  %v599_v31 = vmul.f32 0.70710677, %v346_v28  ;;  %v348_v32 = vpop.f32.mrb[6].mxu0  ;;  %v601_v35 = vmul.f32 0.70710677, %v459_v29  ;;  %v461_v36 = vpop.f32.mrb[6].mxu1 }
 0x127   :  { %1676 = verf.f32 %v598_v27  ;;  %v350_v37 = vpop.f32.mrb[7].mxu0  ;;  %v602_v39 = vmul.f32 0.70710677, %v348_v32  ;;  %v604_v40 = vmul.f32 0.70710677, %v461_v36  ;;  %v463_v41 = vpop.f32.mrb[7].mxu1 }
 0x128   :  { %1678 = verf.f32 %v600_v30  ;;  %v603_v45 = vmul.f32 0.70710677, %v350_v37  ;;  %v605_v49 = vmul.f32 0.70710677, %v463_v41  ;;  %v1960_v52 = vmul.f32 0.5, %v344_v25 }
 0x129   :  { %v1661_v42 = vpop.eup %1660  ;;  %1680 = verf.f32 %v599_v31  ;;  %v1962_v53 = vmul.f32 0.5, %v457_v26  ;;  %v1964_v56 = vmul.f32 0.5, %v346_v28  ;;  %v1966_v57 = vmul.f32 0.5, %v459_v29 }
 0x12a   :  { %v1663_v46 = vpop.eup %1662  ;;  %1682 = verf.f32 %v601_v35  ;;  %v718_v55 = vadd.f32 1.0, %v1661_v42  ;;  %v1968_v62 = vmul.f32 0.5, %v348_v32  ;;  %v1970_v63 = vmul.f32 0.5, %v461_v36 }
 0x12b   :  { %v1665_v50 = vpop.eup %1664  ;;  %1684 = verf.f32 %v602_v39  ;;  %v720_v61 = vadd.f32 1.0, %v1663_v46  ;;  %v1972_v5 = vmul.f32 0.5, %v350_v37  ;;  %v1990_v26 = vmul.f32 0.5, %v463_v41 }
 0x12c   :  { %v1667_v54 = vpop.eup %1666  ;;  %1686 = verf.f32 %v604_v40  ;;  %v354_v58 = vpop.f32.mrb[8].mxu0  ;;  %v719_v9 = vadd.f32 1.0, %v1665_v50  ;;  %v1980_v15 = vmul.f32 %v718_v55, %v526_v33 }
 0x12d   :  { %v467_v59 = vpop.f32.mrb[8].mxu1  ;;  %v1669_v60 = vpop.eup %1668  ;;  %1688 = verf.f32 %v603_v45  ;;  %v606_v6 = vmul.f32 0.70710677, %v354_v58  ;;  %v721_v16 = vadd.f32 1.0, %v1667_v54  ;;  %v1984_v19 = vmul.f32 %v720_v61, %v528_v34 }
 0x12e   :  { %v356_v1 = vpop.f32.mrb[9].mxu0  ;;  %v469_v2 = vpop.f32.mrb[9].mxu1  ;;  %v722_v4 = vadd.f32 1.0, %v1669_v60  ;;  %1690 = verf.f32 %v605_v49  ;;  %v608_v11 = vmul.f32 0.70710677, %v467_v59  ;;  %v783_v28 = vmul.f32 %v719_v9, %v1954_v38 }
 0x12f   :  { %v1671_v3 = vpop.eup %1670  ;;  %v358_v0 = vpop.f32.mrb[10].mxu0  ;;  %1692 = verf.f32 %v606_v6  ;;  %v607_v22 = vmul.f32 0.70710677, %v356_v1  ;;  %v1995_v31 = vmul.f32 0.5, %v354_v58  ;;  %v785_v33 = vmul.f32 %v721_v16, %v529_v43 }
 0x130   :  { %v1974_v7 = vpop.f32.mrb[10].mxu1  ;;  %v1673_v8 = vpop.eup %1672  ;;  %v724_v10 = vadd.f32 1.0, %v1671_v3  ;;  %v1982_v17 = vmul.f32 %v722_v4, %v530_v44  ;;  %1694 = verf.f32 %v608_v11  ;;  %v609_v35 = vmul.f32 0.70710677, %v469_v2 }
 0x131   :  { %v1976_v12 = vpop.f32.mrb[11].mxu0  ;;  %v1978_v13 = vpop.f32.mrb[11].mxu1  ;;  %v723_v21 = vadd.f32 1.0, %v1673_v8  ;;  %1696 = verf.f32 %v607_v22  ;;  %v2002_v41 = vmul.f32 0.5, %v467_v59  ;;  %v2004_v38 = vmul.f32 0.5, %v356_v1 }
 0x132   :  { %v1675_v14 = vpop.eup %1674  ;;  %v1986_v20 = vmul.f32 %v724_v10, %v532_v47  ;;  %v846_v24 = vpack.c.bf16 %v1982_v17, %v1980_v15  ;;  %v610_v42 = vmul.f32 0.70710677, %v358_v0  ;;  %v2011_v47 = vmul.f32 0.5, %v469_v2 }
 0x133   :  { %v1677_v18 = vpop.eup %1676  ;;  %v725_v25 = vadd.f32 1.0, %v1675_v14  ;;  %v787_v40 = vmul.f32 %v723_v21, %v1956_v48  ;;  %1698 = verf.f32 %v609_v35  ;;  %v612_v49 = vmul.f32 0.70710677, %v1974_v7 }
 0x134   :  { %v1679_v23 = vpop.eup %1678  ;;  %v848_v29 = vpack.c.bf16 %v1986_v20, %v1984_v19  ;;  %v726_v30 = vadd.f32 1.0, %v1677_v18  ;;  %v1997_v36 = vpop.f32.mrb[12].mxu0  ;;  %1700 = verf.f32 %v610_v42  ;;  %v2028_v2 = vmul.f32 0.5, %v358_v0 }
 0x135   :  { %v1681_v27 = vpop.eup %1680  ;;  %v728_v34 = vadd.f32 1.0, %v1679_v23  ;;  %v1999_v37 = vpop.f32.mrb[12].mxu1  ;;  %v789_v46 = vmul.f32 %v725_v25, %v1958_v51  ;;  %1702 = verf.f32 %v612_v49  ;;  %v611_v3 = vmul.f32 0.70710677, %v1976_v12 }
 0x136   :  { %v1683_v32 = vpop.eup %1682  ;;  %v2006_v44 = vpop.f32.mrb[13].mxu0  ;;  %v2019_v55 = vmul.f32 %v726_v30, %v1960_v52  ;;  %v727_v58 = vadd.f32 1.0, %v1681_v27  ;;  %v613_v8 = vmul.f32 0.70710677, %v1978_v13  ;;  %v847_v11 = vpack.c.bf16 %v787_v40, %v783_v28 }
 0x137   :  { %v1685_v39 = vpop.eup %1684  ;;  %v2008_v45 = vpop.f32.mrb[13].mxu1  ;;  %v729_v59 = vadd.f32 1.0, %v1683_v32  ;;  %v2026_v1 = vmul.f32 %v728_v34, %v1962_v53  ;;  %1704 = verf.f32 %v611_v3  ;;  %v849_v14 = vpack.c.bf16 %v789_v46, %v785_v33 }
 0x138   :  { %v1687_v43 = vpop.eup %1686  ;;  %v2014_v50 = vpop.f32.mrb[14].mxu0  ;;  %v730_v4 = vadd.f32 1.0, %v1685_v39  ;;  %v791_v16 = vmul.f32 %v727_v58, %v1964_v56  ;;  %v2037_v0 = vmul.f32 0.5, %v1974_v7  ;;  %1706 = verf.f32 %v613_v8  ;;  %1166 = vmatprep.mubr.bf16.mxu0 %v847_v11 }
 0x139   :  { %v2016_v48 = vpop.f32.mrb[14].mxu1  ;;  %v1689_v54 = vpop.eup %1688  ;;  %v732_v6 = vadd.f32 1.0, %v1687_v43  ;;  %v2034_v53 = vmul.f32 %v729_v59, %v1966_v57  ;;  %v2040_v20 = vmul.f32 0.5, %v1976_v12  ;;  %1263 = vmatprep.mubr.bf16.mxu1 %v849_v14  ;;  %v614_v21 = vmul.f32 0.70710677, %v1997_v36  ;;  %1167 = vmatmul.mubr.bf16.vlgmr.msra.gmra.mrb[32].mxu0 %v846_v24 }
 0x13a   :  { %v2021_v60 = vpop.f32.mrb[15].mxu0  ;;  %v2023_v61 = vpop.f32.mrb[15].mxu1  ;;  %v731_v52 = vadd.f32 1.0, %v1689_v54  ;;  %v616_v22 = vmul.f32 0.70710677, %v1999_v37  ;;  %v2045_v56 = vmul.f32 %v730_v4, %v1968_v62  ;;  %v2051_v7 = vmul.f32 0.5, %v1978_v13  ;;  %1264 = vmatmul.mubr.bf16.vlgmr.msra.gmra.mrb[32].mxu1 %v848_v29 }
 0x13b   :  { %v1691_v51 = vpop.eup %1690  ;;  %v2048_v57 = vmul.f32 %v732_v6, %v1970_v63  ;;  %v615_v12 = vmul.f32 0.70710677, %v2006_v44  ;;  %1708 = verf.f32 %v614_v21  ;;  %v617_v13 = vmul.f32 0.70710677, %v2008_v45 }
 0x13c   :  { %v1693_v9 = vpop.eup %1692  ;;  %v733_v10 = vadd.f32 1.0, %v1691_v51  ;;  %v2057_v23 = vpop.f32.mrb[16].mxu0  ;;  %v795_v62 = vmul.f32 %v731_v52, %v1972_v5  ;;  %v2069_v17 = vmul.f32 0.5, %v1997_v36  ;;  %1710 = verf.f32 %v616_v22 }
 0x13d   :  { %v1695_v18 = vpop.eup %1694  ;;  %v734_v19 = vadd.f32 1.0, %v1693_v9  ;;  %v2059_v25 = vpop.f32.mrb[16].mxu1  ;;  %v618_v24 = vmul.f32 0.70710677, %v2014_v50  ;;  %v2080_v33 = vmul.f32 0.5, %v1999_v37  ;;  %1712 = verf.f32 %v615_v12 }
 0x13e   :  { %v1697_v27 = vpop.eup %1696  ;;  %v797_v63 = vmul.f32 %v733_v10, %v1990_v26  ;;  %v2064_v28 = vpop.f32.mrb[17].mxu0  ;;  %v736_v15 = vadd.f32 1.0, %v1695_v18  ;;  %v620_v34 = vmul.f32 0.70710677, %v2016_v48  ;;  %v2088_v42 = vmul.f32 0.5, %v2006_v44 }
 0x13f   :  { %v2066_v30 = vpop.f32.mrb[17].mxu1  ;;  %v2072_v29 = vpop.f32.mrb[18].mxu0  ;;  %v2077_v26 = vmul.f32 %v734_v19, %v1995_v31  ;;  %v735_v40 = vadd.f32 1.0, %v1697_v27  ;;  %1714 = verf.f32 %v617_v13  ;;  %v619_v43 = vmul.f32 0.70710677, %v2021_v60 }
 0x140   :  { %v2074_v32 = vpop.f32.mrb[18].mxu1  ;;  %v1699_v5 = vpop.eup %1698  ;;  %v2092_v46 = vmul.f32 0.5, %v2008_v45  ;;  %1716 = verf.f32 %v618_v24  ;;  %v621_v37 = vmul.f32 0.70710677, %v2023_v61  ;;  %v851_v49 = vpack.c.bf16 %v795_v62, %v791_v16 }
 0x141   :  { %v2083_v35 = vpop.f32.mrb[19].mxu0  ;;  %v2085_v36 = vpop.f32.mrb[19].mxu1  ;;  %v2096_v54 = vmul.f32 %v736_v15, %v2002_v41  ;;  %v2099_v58 = vmul.f32 0.5, %v2014_v50  ;;  %1718 = verf.f32 %v620_v34  ;;  %v853_v44 = vpack.c.bf16 %v797_v63, %v2034_v53 }
 0x142   :  { %v1701_v39 = vpop.eup %1700  ;;  %v737_v51 = vadd.f32 1.0, %v1699_v5  ;;  %v2103_v3 = vmul.f32 0.5, %v2016_v48  ;;  %1720 = verf.f32 %v619_v43  ;;  %1174 = vmatprep.mubr.bf16.mxu0 %v851_v49  ;;  %v622_v45 = vmul.f32 0.70710677, %v2057_v23 }
 0x143   :  { %v1703_v31 = vpop.eup %1702  ;;  %v2111_v50 = vmul.f32 %v735_v40, %v2004_v38  ;;  %v738_v52 = vadd.f32 1.0, %v1701_v39  ;;  %1722 = verf.f32 %v621_v37  ;;  %1271 = vmatprep.mubr.bf16.mxu1 %v853_v44  ;;  %v624_v11 = vmul.f32 0.70710677, %v2059_v25 }
 0x144   :  { %v1705_v59 = vpop.eup %1704  ;;  %v2106_v4 = vpop.f32.mrb[20].mxu0  ;;  %v740_v8 = vadd.f32 1.0, %v1703_v31  ;;  %1724 = verf.f32 %v622_v45  ;;  %v850_v14 = vpack.c.bf16 %v2045_v56, %v2019_v55  ;;  %v2125_v18 = vmul.f32 0.5, %v2021_v60 }
 0x145   :  { %v2108_v6 = vpop.f32.mrb[20].mxu1  ;;  %v1707_v41 = vpop.eup %1706  ;;  %v739_v10 = vadd.f32 1.0, %v1705_v59  ;;  %v852_v19 = vpack.c.bf16 %v2048_v57, %v2026_v1  ;;  %v623_v21 = vmul.f32 0.70710677, %v2064_v28  ;;  %v801_v55 = vmul.f32 %v737_v51, %v2011_v47 }
 0x146   :  { %v2113_v9 = vpop.f32.mrb[21].mxu0  ;;  %v2115_v48 = vpop.f32.mrb[21].mxu1  ;;  %v741_v38 = vadd.f32 1.0, %v1707_v41  ;;  %v2136_v56 = vmul.f32 0.5, %v2023_v61  ;;  %1726 = verf.f32 %v624_v11  ;;  %1175 = vmatmul.mubr.bf16.gmra.mrb[36].mxu0 %v850_v14  ;;  %v625_v60 = vmul.f32 0.70710677, %v2066_v30 }
 0x147   :  { %v2120_v16 = vpop.f32.mrb[22].mxu0  ;;  %v2122_v53 = vpop.f32.mrb[22].mxu1  ;;  %v2140_v63 = vmul.f32 %v738_v52, %v2028_v2  ;;  %v2143_v1 = vmul.f32 0.5, %v2057_v23  ;;  %1272 = vmatmul.mubr.bf16.gmra.mrb[36].mxu1 %v852_v19  ;;  %1728 = verf.f32 %v623_v21  ;;  %v626_v57 = vmul.f32 0.70710677, %v2072_v29 }
 0x148   :  { %v2130_v22 = vpop.f32.mrb[23].mxu0  ;;  %v2132_v12 = vpop.f32.mrb[23].mxu1  ;;  %v804_v47 = vmul.f32 %v740_v8, %v2037_v0  ;;  %v803_v61 = vmul.f32 %v739_v10, %v2040_v20  ;;  %v2149_v15 = vmul.f32 0.5, %v2059_v25  ;;  %v628_v24 = vmul.f32 0.70710677, %v2074_v32 }
 0x149   :  { %v1709_v27 = vpop.eup %1708  ;;  %v805_v2 = vmul.f32 %v741_v38, %v2051_v7  ;;  %v2154_v23 = vmul.f32 0.5, %v2064_v28  ;;  %v2157_v34 = vmul.f32 0.5, %v2066_v30  ;;  %1730 = verf.f32 %v625_v60 }
 0x14a   :  { %v1711_v62 = vpop.eup %1710  ;;  %v742_v40 = vadd.f32 1.0, %v1709_v27  ;;  %1732 = verf.f32 %v626_v57  ;;  %v627_v20 = vmul.f32 0.70710677, %v2083_v35  ;;  %v2165_v7 = vmul.f32 0.5, %v2072_v29 }
 0x14b   :  { %v1713_v13 = vpop.eup %1712  ;;  %v744_v0 = vadd.f32 1.0, %v1711_v62  ;;  %1734 = verf.f32 %v628_v24  ;;  %v629_v28 = vmul.f32 0.70710677, %v2085_v36  ;;  %v2173_v51 = vmul.f32 0.5, %v2074_v32 }
 0x14c   :  { %v1715_v5 = vpop.eup %1714  ;;  %v2160_v25 = vpop.f32.mrb[24].mxu0  ;;  %v743_v37 = vadd.f32 1.0, %v1713_v13  ;;  %1736 = verf.f32 %v627_v20  ;;  %v855_v45 = vpack.c.bf16 %v803_v61, %v2111_v50  ;;  %v857_v11 = vpack.c.bf16 %v805_v2, %v801_v55 }
 0x14d   :  { %v1717_v39 = vpop.eup %1716  ;;  %v2162_v43 = vpop.f32.mrb[24].mxu1  ;;  %v745_v59 = vadd.f32 1.0, %v1715_v5  ;;  %1738 = verf.f32 %v629_v28  ;;  %v2185_v32 = vmul.f32 %v742_v40, %v2069_v17  ;;  %v2188_v21 = vmul.f32 %v744_v0, %v2080_v33 }
 0x14e   :  { %v1719_v31 = vpop.eup %1718  ;;  %v2168_v30 = vpop.f32.mrb[25].mxu0  ;;  %v746_v8 = vadd.f32 1.0, %v1717_v39  ;;  %v2191_v50 = vmul.f32 0.5, %v2083_v35  ;;  %1182 = vmatprep.mubr.bf16.mxu0 %v855_v45  ;;  %v630_v27 = vmul.f32 0.70710677, %v2106_v4  ;;  %v2195_v60 = vmul.f32 %v743_v37, %v2088_v42  ;;  %1279 = vmatprep.mubr.bf16.mxu1 %v857_v11 }
 0x14f   :  { %v2170_v49 = vpop.f32.mrb[25].mxu1  ;;  %v1721_v44 = vpop.eup %1720  ;;  %v748_v10 = vadd.f32 1.0, %v1719_v31  ;;  %v632_v57 = vmul.f32 0.70710677, %v2108_v6  ;;  %v854_v33 = vpack.c.bf16 %v2140_v63, %v2077_v26  ;;  %v856_v35 = vpack.c.bf16 %v804_v47, %v2096_v54 }
 0x150   :  { %v2176_v41 = vpop.f32.mrb[26].mxu0  ;;  %v2178_v52 = vpop.f32.mrb[26].mxu1  ;;  %v747_v55 = vadd.f32 1.0, %v1721_v44  ;;  %1740 = verf.f32 %v630_v27  ;;  %v809_v24 = vmul.f32 %v745_v59, %v2092_v46  ;;  %v2203_v5 = vmul.f32 %v746_v8, %v2099_v58 }
 0x151   :  { %v1723_v29 = vpop.eup %1722  ;;  %v2180_v14 = vpop.f32.mrb[27].mxu0  ;;  %v2206_v42 = vmul.f32 %v748_v10, %v2103_v3  ;;  %v2209_v2 = vmul.f32 0.5, %v2085_v36  ;;  %1742 = verf.f32 %v632_v57  ;;  %1183 = vmatmul.mubr.bf16.gmra.mrb[40].mxu0 %v854_v33  ;;  %1280 = vmatmul.mubr.bf16.gmra.mrb[40].mxu1 %v856_v35  ;;  %v631_v26 = vmul.f32 0.70710677, %v2113_v9 }
 0x152   :  { %v2182_v38 = vpop.f32.mrb[27].mxu1  ;;  %v1725_v19 = vpop.eup %1724  ;;  %v749_v62 = vadd.f32 1.0, %v1723_v29  ;;  %v633_v54 = vmul.f32 0.70710677, %v2115_v48  ;;  %v811_v46 = vmul.f32 %v747_v55, %v2125_v18  ;;  %v2215_v58 = vmul.f32 0.5, %v2106_v4 }
 0x153   :  { %v1727_v13 = vpop.eup %1726  ;;  %v750_v17 = vadd.f32 1.0, %v1725_v19  ;;  %v634_v3 = vmul.f32 0.70710677, %v2120_v16  ;;  %v2227_v37 = vmul.f32 0.5, %v2108_v6  ;;  %1744 = verf.f32 %v631_v26 }
 0x154   :  { %v1729_v61 = vpop.eup %1728  ;;  %v752_v39 = vadd.f32 1.0, %v1727_v13  ;;  %v2218_v40 = vpop.f32.mrb[28].mxu0  ;;  %v813_v20 = vmul.f32 %v749_v62, %v2136_v56  ;;  %v2234_v44 = vmul.f32 0.5, %v2113_v9  ;;  %v2237_v59 = vmul.f32 0.5, %v2115_v48 }
 0x155   :  { %v1731_v63 = vpop.eup %1730  ;;  %v751_v47 = vadd.f32 1.0, %v1729_v61  ;;  %v2220_v36 = vpop.f32.mrb[28].mxu1  ;;  %v2224_v31 = vmul.f32 %v750_v17, %v2143_v1  ;;  %1746 = verf.f32 %v633_v54  ;;  %v636_v56 = vmul.f32 0.70710677, %v2122_v53 }
 0x156   :  { %v1733_v0 = vpop.eup %1732  ;;  %v2229_v18 = vpop.f32.mrb[29].mxu0  ;;  %v2245_v29 = vmul.f32 %v752_v39, %v2149_v15  ;;  %v753_v8 = vadd.f32 1.0, %v1731_v63  ;;  %1748 = verf.f32 %v634_v3  ;;  %v635_v10 = vmul.f32 0.70710677, %v2130_v22 }
 0x157   :  { %v2231_v4 = vpop.f32.mrb[29].mxu1  ;;  %v1735_v28 = vpop.eup %1734  ;;  %v2253_v19 = vmul.f32 %v751_v47, %v2154_v23  ;;  %v754_v27 = vadd.f32 1.0, %v1733_v0  ;;  %v2256_v55 = vmul.f32 0.5, %v2120_v16  ;;  %1750 = verf.f32 %v636_v56 }
 0x158   :  { %v2240_v1 = vpop.f32.mrb[30].mxu0  ;;  %v2242_v45 = vpop.f32.mrb[30].mxu1  ;;  %v2259_v15 = vmul.f32 0.5, %v2122_v53  ;;  %1752 = verf.f32 %v635_v10  ;;  %v637_v62 = vmul.f32 0.70710677, %v2132_v12  ;;  %v859_v57 = vpack.c.bf16 %v811_v46, %v2195_v60 }
 0x159   :  { %v1737_v6 = vpop.eup %1736  ;;  %v2248_v9 = vpop.f32.mrb[31].mxu0  ;;  %v756_v13 = vadd.f32 1.0, %v1735_v28  ;;  %v861_v33 = vpack.c.bf16 %v813_v20, %v809_v24  ;;  %v638_v35 = vmul.f32 0.70710677, %v2160_v25  ;;  %v817_v61 = vmul.f32 %v753_v8, %v2157_v34 }
 0x15a   :  { %v2250_v11 = vpop.f32.mrb[31].mxu1  ;;  %v1739_v48 = vpop.eup %1738  ;;  %v755_v17 = vadd.f32 1.0, %v1737_v6  ;;  %1754 = verf.f32 %v637_v62  ;;  %1190 = vmatprep.mubr.bf16.mxu0 %v859_v57  ;;  %v640_v16 = vmul.f32 0.70710677, %v2162_v43  ;;  %v2267_v53 = vmul.f32 %v754_v27, %v2165_v7 }
 0x15b   :  { %v1741_v23 = vpop.eup %1740  ;;  %v757_v39 = vadd.f32 1.0, %v1739_v48  ;;  %1287 = vmatprep.mubr.bf16.mxu1 %v861_v33  ;;  %1756 = verf.f32 %v638_v35  ;;  %v858_v60 = vpack.c.bf16 %v2203_v5, %v2185_v32  ;;  %v860_v24 = vpack.c.bf16 %v2206_v42, %v2188_v21 }
 0x15c   :  { %v1743_v26 = vpop.eup %1742  ;;  %v758_v54 = vadd.f32 1.0, %v1741_v23  ;;  %v2274_v34 = vmul.f32 0.5, %v2130_v22  ;;  %1758 = verf.f32 %v640_v16  ;;  %v639_v63 = vmul.f32 0.70710677, %v2168_v30 }
 0x15d   :  { %v820_v46 = vmul.f32 %v756_v13, %v2173_v51  ;;  %v819_v7 = vmul.f32 %v755_v17, %v2191_v50  ;;  %v2280_v47 = vmul.f32 0.5, %v2132_v12  ;;  %1191 = vmatmul.mubr.bf16.gmra.mrb[44].mxu0 %v858_v60  ;;  %1288 = vmatmul.mubr.bf16.gmra.mrb[44].mxu1 %v860_v24  ;;  %v641_v32 = vmul.f32 0.70710677, %v2170_v49  ;;  %v1745_v21 = vpop.eup %1744 }
 0x15e   :  { %v821_v5 = vmul.f32 %v757_v39, %v2209_v2  ;;  %v2285_v22 = vmul.f32 0.5, %v2160_v25  ;;  %1760 = verf.f32 %v639_v63  ;;  %v642_v42 = vmul.f32 0.70710677, %v2176_v41 }
 0x15f   :  { %v1747_v3 = vpop.eup %1746  ;;  %v760_v51 = vadd.f32 1.0, %v1743_v26  ;;  %v576_v50 = vmul.f32 0.5, %v2162_v43  ;;  %1762 = verf.f32 %v641_v32  ;;  %v644_v12 = vmul.f32 0.70710677, %v2178_v52 }
 0x160   :  { %v1749_v0 = vpop.eup %1748  ;;  %v2291_v20 = vmul.f32 %v758_v54, %v2215_v58  ;;  %v575_v28 = vmul.f32 0.5, %v2168_v30  ;;  %1764 = verf.f32 %v642_v42  ;;  %v643_v25 = vmul.f32 0.70710677, %v2180_v14 }
 0x161   :  { %v1751_v2 = vpop.eup %1750  ;;  %v577_v56 = vmul.f32 0.5, %v2170_v49  ;;  %v578_v6 = vmul.f32 0.5, %v2176_v41  ;;  %1766 = verf.f32 %v644_v12  ;;  %v645_v43 = vmul.f32 0.70710677, %v2182_v38 }
 0x162   :  { %v1753_v8 = vpop.eup %1752  ;;  %v759_v10 = vadd.f32 1.0, %v1745_v21  ;;  %v761_v48 = vadd.f32 1.0, %v1747_v3  ;;  %1768 = verf.f32 %v643_v25  ;;  %v863_v58 = vpack.c.bf16 %v819_v7, %v2253_v19 }
 0x163   :  { %v2300_v27 = vmul.f32 %v760_v51, %v2227_v37  ;;  %v580_v30 = vmul.f32 0.5, %v2178_v52  ;;  %1770 = verf.f32 %v645_v43  ;;  %v865_v62 = vpack.c.bf16 %v821_v5, %v817_v61 }
 0x164   :  { %v1755_v57 = vpop.eup %1754  ;;  %v762_v49 = vadd.f32 1.0, %v1749_v0  ;;  %v764_v13 = vadd.f32 1.0, %v1751_v2  ;;  %v579_v41 = vmul.f32 0.5, %v2180_v14  ;;  %1198 = vmatprep.mubr.bf16.mxu0 %v863_v58  ;;  %v646_v17 = vmul.f32 0.70710677, %v2218_v40 }
 0x165   :  { %v1757_v33 = vpop.eup %1756  ;;  %v763_v35 = vadd.f32 1.0, %v1753_v8  ;;  %v581_v23 = vmul.f32 0.5, %v2182_v38  ;;  %1295 = vmatprep.mubr.bf16.mxu1 %v865_v62  ;;  %v648_v37 = vmul.f32 0.70710677, %v2220_v36  ;;  %v862_v52 = vpack.c.bf16 %v2267_v53, %v2224_v31 }
 0x166   :  { %v1759_v19 = vpop.eup %1758  ;;  %v823_v61 = vmul.f32 %v759_v10, %v2234_v44  ;;  %v825_v39 = vmul.f32 %v761_v48, %v2237_v59  ;;  %v765_v16 = vadd.f32 1.0, %v1755_v57  ;;  %v864_v14 = vpack.c.bf16 %v820_v46, %v2245_v29 }
 0x167   :  { %v766_v60 = vadd.f32 1.0, %v1757_v33  ;;  %v768_v24 = vadd.f32 1.0, %v1759_v19  ;;  %1772 = verf.f32 %v646_v17  ;;  %1199 = vmatmul.mubr.bf16.gmra.mrb[48].mxu0 %v862_v52  ;;  %v647_v38 = vmul.f32 0.70710677, %v2229_v18 }
 0x168   :  { %v1761_v26 = vpop.eup %1760  ;;  %v826_v54 = vmul.f32 %v762_v49, %v2256_v55  ;;  %v828_v63 = vmul.f32 %v764_v13, %v2259_v15  ;;  %1774 = verf.f32 %v648_v37  ;;  %1296 = vmatmul.mubr.bf16.gmra.mrb[48].mxu1 %v864_v14  ;;  %v649_v31 = vmul.f32 0.70710677, %v2231_v4 }
 0x169   :  { %v1763_v44 = vpop.eup %1762  ;;  %v827_v59 = vmul.f32 %v763_v35, %v2274_v34  ;;  %v767_v53 = vadd.f32 1.0, %v1761_v26  ;;  %1776 = verf.f32 %v647_v38  ;;  %v650_v29 = vmul.f32 0.70710677, %v2240_v1 }
 0x16a   :  { %v1765_v46 = vpop.eup %1764  ;;  %v829_v7 = vmul.f32 %v765_v16, %v2280_v47  ;;  %v769_v32 = vadd.f32 1.0, %v1763_v44  ;;  %1778 = verf.f32 %v649_v31  ;;  %v652_v55 = vmul.f32 0.70710677, %v2242_v45 }
 0x16b   :  { %v1767_v21 = vpop.eup %1766  ;;  %v830_v15 = vmul.f32 %v766_v60, %v2285_v22  ;;  %v832_v5 = vmul.f32 %v768_v24, %v576_v50  ;;  %v770_v42 = vadd.f32 1.0, %v1765_v46  ;;  %1780 = verf.f32 %v650_v29 }
 0x16c   :  { %v1769_v3 = vpop.eup %1768  ;;  %v831_v51 = vmul.f32 %v767_v53, %v575_v28  ;;  %v772_v34 = vadd.f32 1.0, %v1767_v21  ;;  %1782 = verf.f32 %v652_v55  ;;  %v651_v12 = vmul.f32 0.70710677, %v2248_v9 }
 0x16d   :  { %v1771_v0 = vpop.eup %1770  ;;  %v833_v25 = vmul.f32 %v769_v32, %v577_v56  ;;  %v834_v2 = vmul.f32 %v770_v42, %v578_v6  ;;  %v771_v47 = vadd.f32 1.0, %v1769_v3  ;;  %v653_v43 = vmul.f32 0.70710677, %v2250_v11 }
 0x16e   :  { %v836_v8 = vmul.f32 %v772_v34, %v580_v30  ;;  %v773_v10 = vadd.f32 1.0, %v1771_v0  ;;  %1784 = verf.f32 %v651_v12  ;;  %v867_v48 = vpack.c.bf16 %v827_v59, %v823_v61 }
 0x16f   :  { %v835_v22 = vmul.f32 %v771_v47, %v579_v41  ;;  %1786 = verf.f32 %v653_v43  ;;  %v869_v50 = vpack.c.bf16 %v829_v7, %v825_v39  ;;  %v866_v58 = vpack.c.bf16 %v826_v54, %v2291_v20 }
 0x170   :  { %v837_v28 = vmul.f32 %v773_v10, %v581_v23  ;;  %1206 = vmatprep.mubr.bf16.mxu0 %v867_v48  ;;  %v868_v62 = vpack.c.bf16 %v828_v63, %v2300_v27  ;;  %v870_v57 = vpack.c.bf16 %v834_v2, %v830_v15  ;;  %v872_v49 = vpack.c.bf16 %v836_v8, %v832_v5 }
 0x171   :  { %v1773_v56 = vpop.eup %1772  ;;  %1303 = vmatprep.mubr.bf16.mxu1 %v869_v50  ;;  %1207 = vmatmul.mubr.bf16.gmra.mrb[52].mxu0 %v866_v58  ;;  %v871_v6 = vpack.c.bf16 %v835_v22, %v831_v51  ;;  %v582_v37 = vmul.f32 0.5, %v2218_v40  ;;  %v586_v27 = vmul.f32 0.5, %v2240_v1  ;;  %v584_v19 = vmul.f32 0.5, %v2220_v36 }
 0x172   :  { %v1775_v13 = vpop.eup %1774  ;;  %1304 = vmatmul.mubr.bf16.gmra.mrb[52].mxu1 %v868_v62  ;;  %v873_v30 = vpack.c.bf16 %v837_v28, %v833_v25  ;;  %v774_v33 = vadd.f32 1.0, %v1773_v56  ;;  %v588_v39 = vmul.f32 0.5, %v2242_v45  ;;  %v583_v24 = vmul.f32 0.5, %v2229_v18 }
 0x173   :  { %v1777_v17 = vpop.eup %1776  ;;  %1214 = vmatprep.mubr.bf16.mxu0 %v871_v6  ;;  %v776_v20 = vadd.f32 1.0, %v1775_v13  ;;  %v587_v40 = vmul.f32 0.5, %v2248_v9  ;;  %v585_v1 = vmul.f32 0.5, %v2231_v4  ;;  %v589_v36 = vmul.f32 0.5, %v2250_v11 }
 0x174   :  { %v1779_v41 = vpop.eup %1778  ;;  %1311 = vmatprep.mubr.bf16.mxu1 %v873_v30  ;;  %v775_v61 = vadd.f32 1.0, %v1777_v17  ;;  %v838_v60 = vmul.f32 %v774_v33, %v582_v37 }
 0x175   :  { %v1781_v35 = vpop.eup %1780  ;;  %v777_v38 = vadd.f32 1.0, %v1779_v41  ;;  %v840_v63 = vmul.f32 %v776_v20, %v584_v19 }
 0x176   :  { %v1783_v23 = vpop.eup %1782  ;;  %v778_v52 = vadd.f32 1.0, %v1781_v35  ;;  %v839_v53 = vmul.f32 %v775_v61, %v583_v24 }
 0x177   :  { %v780_v16 = vadd.f32 1.0, %v1783_v23  ;;  %v841_v18 = vmul.f32 %v777_v38, %v585_v1 }
 0x178   :  { %v1785_v14 = vpop.eup %1784  ;;  %v842_v26 = vmul.f32 %v778_v52, %v586_v27 }
 0x179   :  { %v1787_v54 = vpop.eup %1786  ;;  %v844_v31 = vmul.f32 %v780_v16, %v588_v39  ;;  %v779_v44 = vadd.f32 1.0, %v1785_v14  ;;  %1215 = vmatmul.mubr.bf16.gmra.mrb[56].mxu0 %v870_v57 }
 0x17a   :  { %v781_v59 = vadd.f32 1.0, %v1787_v54  ;;  %1312 = vmatmul.mubr.bf16.gmra.mrb[56].mxu1 %v872_v49  ;;  %v874_v45 = vpack.c.bf16 %v842_v26, %v838_v60 }
 0x17b   :  { %v843_v29 = vmul.f32 %v779_v44, %v587_v40  ;;  %v876_v46 = vpack.c.bf16 %v844_v31, %v840_v63 }
 0x17c   :  { %v845_v7 = vmul.f32 %v781_v59, %v589_v36 }
 0x17d   :  { %v875_v32 = vpack.c.bf16 %v843_v29, %v839_v53 }
 0x17e   :  { %v877_v55 = vpack.c.bf16 %v845_v7, %v841_v18 }
 0x17f   :  { %1222 = vmatprep.mubr.bf16.mxu0 %v875_v32 }
 0x180   :  { %1319 = vmatprep.mubr.bf16.mxu1 %v877_v55 }
 0x181   :  { %1223 = vmatmul.mubr.bf16.gmra.mrb[60].mxu0 %v874_v45 }
 0x182   :  { %1320 = vmatmul.mubr.bf16.gmra.mrb[60].mxu1 %v876_v46 }
 0x20c   :  { %v1450_v9 = vpop.f32.mrb[32].mxu0 }
 0x20d   :  { %v1514_v21 = vpop.f32.mrb[32].mxu1  ;;  %v1451_v15 = vpop.f32.mrb[33].mxu0 }
 0x20e   :  { %v1515_v4 = vpop.f32.mrb[33].mxu1  ;;  %v1452_v5 = vadd.f32 %v1451_v15, %v1450_v9  ;;  %v1453_v42 = vpop.f32.mrb[34].mxu0 }
 0x20f   :  { %v1516_v11 = vadd.f32 %v1515_v4, %v1514_v21  ;;  %v1517_v3 = vpop.f32.mrb[34].mxu1  ;;  %v1454_v51 = vpop.f32.mrb[35].mxu0 }
 0x210   :  { %v1518_v34 = vpop.f32.mrb[35].mxu1  ;;  %v1455_v0 = vadd.f32 %v1454_v51, %v1453_v42 }
 0x211   :  { %v1266_v12 = vadd.f32 %v1516_v11, %v1452_v5  ;;  %v1519_v25 = vadd.f32 %v1518_v34, %v1517_v3 }
 0x213   :  { %1328 = vst [vmem:[#allocation7] sm:$0xff] %v1266_v12  ;;  %v1269_v2 = vadd.f32 %v1519_v25, %v1455_v0 }
 0x215   :  { %1329 = vst [vmem:[#allocation7 + $0x8] sm:$0xff] %v1269_v2 }
 0x219   :  { %v1456_v47 = vpop.f32.mrb[36].mxu0 }
 0x21a   :  { %v1520_v43 = vpop.f32.mrb[36].mxu1  ;;  %v1457_v8 = vpop.f32.mrb[37].mxu0 }
 0x21b   :  { %v1458_v10 = vadd.f32 %v1457_v8, %v1456_v47  ;;  %v1521_v48 = vpop.f32.mrb[37].mxu1  ;;  %v1459_v22 = vpop.f32.mrb[38].mxu0 }
 0x21c   :  { %v1522_v50 = vadd.f32 %v1521_v48, %v1520_v43  ;;  %v1523_v58 = vpop.f32.mrb[38].mxu1  ;;  %v1460_v28 = vpop.f32.mrb[39].mxu0 }
 0x21d   :  { %v1461_v62 = vadd.f32 %v1460_v28, %v1459_v22  ;;  %v1524_v57 = vpop.f32.mrb[39].mxu1 }
 0x21e   :  { %v1274_v49 = vadd.f32 %v1522_v50, %v1458_v10  ;;  %v1525_v56 = vadd.f32 %v1524_v57, %v1523_v58 }
 0x220   :  { %1330 = vst [vmem:[#allocation7 + $0x10] sm:$0xff] %v1274_v49  ;;  %v1277_v6 = vadd.f32 %v1525_v56, %v1461_v62 }
 0x222   :  { %1331 = vst [vmem:[#allocation7 + $0x18] sm:$0xff] %v1277_v6 }
 0x224   :  { %v1462_v13 = vpop.f32.mrb[40].mxu0  ;;  %v1526_v30 = vpop.f32.mrb[40].mxu1 }
 0x225   :  { %v1463_v17 = vpop.f32.mrb[41].mxu0  ;;  %v1527_v41 = vpop.f32.mrb[41].mxu1 }
 0x226   :  { %v1464_v33 = vadd.f32 %v1463_v17, %v1462_v13  ;;  %v1528_v35 = vadd.f32 %v1527_v41, %v1526_v30  ;;  %v1465_v20 = vpop.f32.mrb[42].mxu0  ;;  %v1529_v23 = vpop.f32.mrb[42].mxu1 }
 0x227   :  { %v1466_v37 = vpop.f32.mrb[43].mxu0  ;;  %v1530_v27 = vpop.f32.mrb[43].mxu1 }
 0x228   :  { %v1282_v52 = vadd.f32 %v1528_v35, %v1464_v33  ;;  %v1467_v19 = vadd.f32 %v1466_v37, %v1465_v20  ;;  %v1531_v61 = vadd.f32 %v1530_v27, %v1529_v23 }
 0x22a   :  { %1332 = vst [vmem:[#allocation7 + $0x20] sm:$0xff] %v1282_v52  ;;  %v1285_v39 = vadd.f32 %v1531_v61, %v1467_v19 }
 0x22c   :  { %1333 = vst [vmem:[#allocation7 + $0x28] sm:$0xff] %v1285_v39 }
 0x230   :  { %v1468_v16 = vpop.f32.mrb[44].mxu0  ;;  %v1532_v14 = vpop.f32.mrb[44].mxu1 }
 0x231   :  { %v1469_v60 = vpop.f32.mrb[45].mxu0  ;;  %v1533_v24 = vpop.f32.mrb[45].mxu1 }
 0x232   :  { %v1470_v38 = vadd.f32 %v1469_v60, %v1468_v16  ;;  %v1534_v26 = vadd.f32 %v1533_v24, %v1532_v14  ;;  %v1471_v54 = vpop.f32.mrb[46].mxu0  ;;  %v1535_v63 = vpop.f32.mrb[46].mxu1 }
 0x233   :  { %v1472_v31 = vpop.f32.mrb[47].mxu0  ;;  %v1536_v40 = vpop.f32.mrb[47].mxu1 }
 0x234   :  { %v1290_v44 = vadd.f32 %v1534_v26, %v1470_v38  ;;  %v1473_v1 = vadd.f32 %v1472_v31, %v1471_v54  ;;  %v1537_v36 = vadd.f32 %v1536_v40, %v1535_v63 }
 0x236   :  { %1334 = vst [vmem:[#allocation7 + $0x30] sm:$0xff] %v1290_v44  ;;  %v1293_v59 = vadd.f32 %v1537_v36, %v1473_v1 }
 0x238   :  { %1335 = vst [vmem:[#allocation7 + $0x38] sm:$0xff] %v1293_v59 }
 0x23a   :  { %v1474_v45 = vpop.f32.mrb[48].mxu0 }
 0x23b   :  { %v1538_v53 = vpop.f32.mrb[48].mxu1  ;;  %v1475_v29 = vpop.f32.mrb[49].mxu0 }
 0x23c   :  { %v1476_v46 = vadd.f32 %v1475_v29, %v1474_v45  ;;  %v1539_v18 = vpop.f32.mrb[49].mxu1  ;;  %v1477_v7 = vpop.f32.mrb[50].mxu0 }
 0x23d   :  { %v1540_v32 = vadd.f32 %v1539_v18, %v1538_v53  ;;  %v1541_v55 = vpop.f32.mrb[50].mxu1  ;;  %v1478_v9 = vpop.f32.mrb[51].mxu0 }
 0x23e   :  { %v1479_v21 = vadd.f32 %v1478_v9, %v1477_v7  ;;  %v1542_v15 = vpop.f32.mrb[51].mxu1 }
 0x23f   :  { %v1298_v4 = vadd.f32 %v1540_v32, %v1476_v46  ;;  %v1543_v5 = vadd.f32 %v1542_v15, %v1541_v55 }
 0x241   :  { %1336 = vst [vmem:[#allocation7 + $0x40] sm:$0xff] %v1298_v4  ;;  %v1301_v11 = vadd.f32 %v1543_v5, %v1479_v21 }
 0x243   :  { %1337 = vst [vmem:[#allocation7 + $0x48] sm:$0xff] %v1301_v11 }
 0x244   :  { %v1480_v42 = vpop.f32.mrb[52].mxu0 }
 0x245   :  { %v1544_v3 = vpop.f32.mrb[52].mxu1  ;;  %v1481_v51 = vpop.f32.mrb[53].mxu0 }
 0x246   :  { %v1482_v34 = vadd.f32 %v1481_v51, %v1480_v42  ;;  %v1545_v12 = vpop.f32.mrb[53].mxu1  ;;  %v1483_v0 = vpop.f32.mrb[54].mxu0 }
 0x247   :  { %v1546_v25 = vadd.f32 %v1545_v12, %v1544_v3  ;;  %v1547_v2 = vpop.f32.mrb[54].mxu1  ;;  %v1484_v47 = vpop.f32.mrb[55].mxu0 }
 0x248   :  { %v1485_v43 = vadd.f32 %v1484_v47, %v1483_v0  ;;  %v1548_v8 = vpop.f32.mrb[55].mxu1 }
 0x249   :  { %v1306_v10 = vadd.f32 %v1546_v25, %v1482_v34  ;;  %v1549_v48 = vadd.f32 %v1548_v8, %v1547_v2 }
 0x24b   :  { %1338 = vst [vmem:[#allocation7 + $0x50] sm:$0xff] %v1306_v10  ;;  %v1309_v22 = vadd.f32 %v1549_v48, %v1485_v43 }
 0x24c   :  { %v1486_v50 = vpop.f32.mrb[56].mxu0 }
 0x24d   :  { %1339 = vst [vmem:[#allocation7 + $0x58] sm:$0xff] %v1309_v22  ;;  %v1550_v58 = vpop.f32.mrb[56].mxu1  ;;  %v1487_v28 = vpop.f32.mrb[57].mxu0 }
 0x24e   :  { %v1488_v62 = vadd.f32 %v1487_v28, %v1486_v50  ;;  %v1551_v57 = vpop.f32.mrb[57].mxu1  ;;  %v1489_v49 = vpop.f32.mrb[58].mxu0 }
 0x24f   :  { %v1552_v56 = vadd.f32 %v1551_v57, %v1550_v58  ;;  %v1553_v6 = vpop.f32.mrb[58].mxu1  ;;  %v1490_v13 = vpop.f32.mrb[59].mxu0 }
 0x250   :  { %v1491_v30 = vadd.f32 %v1490_v13, %v1489_v49  ;;  %v1554_v17 = vpop.f32.mrb[59].mxu1 }
 0x251   :  { %v1314_v41 = vadd.f32 %v1552_v56, %v1488_v62  ;;  %v1555_v33 = vadd.f32 %v1554_v17, %v1553_v6 }
 0x253   :  { %1340 = vst [vmem:[#allocation7 + $0x60] sm:$0xff] %v1314_v41  ;;  %v1317_v35 = vadd.f32 %v1555_v33, %v1491_v30 }
 0x254   :  { %v1492_v20 = vpop.f32.mrb[60].mxu0 }
 0x255   :  { %1341 = vst [vmem:[#allocation7 + $0x68] sm:$0xff] %v1317_v35  ;;  %v1556_v23 = vpop.f32.mrb[60].mxu1  ;;  %v1493_v37 = vpop.f32.mrb[61].mxu0 }
 0x256   :  { %v1494_v27 = vadd.f32 %v1493_v37, %v1492_v20  ;;  %v1557_v52 = vpop.f32.mrb[61].mxu1  ;;  %v1495_v19 = vpop.f32.mrb[62].mxu0 }
 0x257   :  { %v1558_v61 = vadd.f32 %v1557_v52, %v1556_v23  ;;  %v1559_v39 = vpop.f32.mrb[62].mxu1  ;;  %v1496_v16 = vpop.f32.mrb[63].mxu0 }
 0x258   :  { %v1497_v14 = vadd.f32 %v1496_v16, %v1495_v19  ;;  %v1560_v60 = vpop.f32.mrb[63].mxu1 }
 0x259   :  { %v1322_v24 = vadd.f32 %v1558_v61, %v1494_v27  ;;  %v1561_v38 = vadd.f32 %v1560_v60, %v1559_v39 }
 0x25b   :  { %1342 = vst [vmem:[#allocation7 + $0x70] sm:$0xff] %v1322_v24  ;;  %v1325_v26 = vadd.f32 %v1561_v38, %v1497_v14 }
 0x25d   :  { %1343 = vst [vmem:[#allocation7 + $0x78] sm:$0xff] %v1325_v26 }
 0x25e   :  { %1843 = shalt.err (!%p1840_p6)
}
 0x25f   :  { %s1844_s4 = scalar_lea.hbm %s2348_s3, 2048 }
 0x260   :  { %p1845_p7 = scmp.ne.s32.totalorder %s2348_s3, %s1844_s4  ;;  %p1848_p8 = scmp.lt.u32.totalorder %s1844_s4, %s2348_s3 }
 0x262   :  { %p1850_p9 = pnand %p1848_p8, %p1845_p7 }
 0x264   :  { %1853 = shalt.err (!%p1850_p9)
}
 0x265   :  { %s1868_s1 = smov 128   ;;  %s1869_s9 = smov 8  }
 0x266   :  { %1355 = dma.vmem_to_hbm [thread:$0]  %s1350_s27, 2048, %s2348_s3, [#allocation4], %s1868_s1, %s1868_s1, %s1869_s9  }
 0x267   :  { %1858 = dma.done.wait [#allocation4], 2048  }
 0x268   :  { %1859 = vsyncadd [#allocation4], 4294965248 }
 0x269   :  { %1359 = vsyncpa [#allocation3], 1 }
 0x26a   :  { %1360 = vsyncpa [#allocation6], 1 }
 0x26b   :  { %1361 = vsyncpa [#allocation4], 1 }

</bundles_post_ra>
